<compile_context>
chip_gen: v7x
topology: tpu7x:2x2x1
jax: 0.10.0
libtpu: 0.0.40
codegen_flags: <defaults>
</compile_context>

<pallas_src>
import jax
import jax.numpy as jnp
from jax import lax
from jax.experimental import pallas as pl
from jax.experimental.pallas import tpu as pltpu

THETA_PAD = 128  # lane-dense padding of the 6-dim theta output


# ----------------------------------------------------------------------------
# Kernel A: fused  conv(+ReLU)+global-avg-pool  ->  LSTM(+time mean)  ->  fc_loc
# ----------------------------------------------------------------------------
def make_fused_kernel(T_pre, B, U, H, Cf):
    H2 = 2 * H

    def kernel(p_ref, poolm_ref, wc_ref, bc_ref, wih_ref, whh_ref, bl_ref,
               w1a_ref, w1b_ref, b1_ref, w2_ref, b2_ref, theta_ref):
        # ---- per-frame CNN stand-in: 3x3 conv as a K-contraction, lane-dense ----
        y = jnp.dot(wc_ref[...], p_ref[...],
                    preferred_element_type=jnp.float32)            # [Cf, NF*HW]
        y = jnp.maximum(y + bc_ref[...], 0.0)                      # bias + ReLU

        # ---- global average pool per frame: one A @ B^T matmul -> [NF, Cf] ----
        feats = lax.dot_general(poolm_ref[...], y,
                                (((1,), (1,)), ((), ())),
                                preferred_element_type=jnp.float32)

        # ---- single-layer LSTM over prefix frames, mean over time ----
        # input projection (and combined bias) hoisted out of the recurrence
        xw = jnp.dot(feats[:T_pre * B, :], wih_ref[...],
                     preferred_element_type=jnp.float32) + bl_ref[...]  # [T_pre*B, 4H]
        h = jnp.zeros((B, H), jnp.float32)
        c = jnp.zeros((B, H), jnp.float32)
        acc = jnp.zeros((B, H), jnp.float32)
        for t in range(T_pre):                                     # small static trip count
            gates = xw[t * B:(t + 1) * B, :] + jnp.dot(
                h, whh_ref[...], preferred_element_type=jnp.float32)   # [B, 4H]
            i_f = jax.nn.sigmoid(gates[:, :H2])                    # i,f in one pass
            g = jnp.tanh(gates[:, H2:H2 + H])
            o = jax.nn.sigmoid(gates[:, H2 + H:])
            c = i_f[:, H:] * c + i_f[:, :H] * g
            h = o * jnp.tanh(c)
            acc = acc + h
        avg = acc * (1.0 / float(T_pre))                           # [B, H]

        # ---- fc_loc: Linear -> ReLU -> Linear (concat folded into two matmuls) ----
        un = feats[T_pre * B:, :]                                  # [U*B, Cf]
        avg_rep = jnp.concatenate([avg] * U, axis=0)               # [U*B, H]
        h1 = jnp.maximum(
            jnp.dot(un, w1a_ref[...], preferred_element_type=jnp.float32)
            + jnp.dot(avg_rep, w1b_ref[...], preferred_element_type=jnp.float32)
            + b1_ref[...], 0.0)                                    # [U*B, H]
        # lane-padded theta output (wrapper slices [:, :6])
        theta_ref[...] = jnp.dot(h1, w2_ref[...],
                                 preferred_element_type=jnp.float32) + b2_ref[...]

    return kernel


def fused_theta(patches, poolm, params, *, T_pre, B, U):
    Kpad, NHW = patches.shape
    NF = poolm.shape[0]
    Cf = params["wc"].shape[0]
    H = params["whh_t"].shape[0]
    P2 = params["w2_t"].shape[1]
    UB = U * B
    kernel = make_fused_kernel(T_pre, B, U, H, Cf)
    return pl.pallas_call(
        kernel,
        out_shape=jax.ShapeDtypeStruct((UB, P2), jnp.float32),
        grid=(1,),
        in_specs=[
            pl.BlockSpec((Kpad, NHW), lambda i: (0, 0)),
            pl.BlockSpec((NF, NHW), lambda i: (0, 0)),
            pl.BlockSpec((Cf, Kpad), lambda i: (0, 0)),
            pl.BlockSpec((Cf, 1), lambda i: (0, 0)),
            pl.BlockSpec((Cf, 4 * H), lambda i: (0, 0)),
            pl.BlockSpec((H, 4 * H), lambda i: (0, 0)),
            pl.BlockSpec((1, 4 * H), lambda i: (0, 0)),
            pl.BlockSpec((Cf, H), lambda i: (0, 0)),
            pl.BlockSpec((H, H), lambda i: (0, 0)),
            pl.BlockSpec((1, H), lambda i: (0, 0)),
            pl.BlockSpec((H, P2), lambda i: (0, 0)),
            pl.BlockSpec((1, P2), lambda i: (0, 0)),
        ],
        out_specs=pl.BlockSpec((UB, P2), lambda i: (0, 0)),
        compiler_params=pltpu.CompilerParams(
            dimension_semantics=("arbitrary",)),
    )(patches, poolm, params["wc"], params["bc"], params["wih_t"],
      params["whh_t"], params["b_lstm"], params["w1a_t"], params["w1b_t"],
      params["b1"], params["w2_t"], params["b2"])


# ----------------------------------------------------------------------------
# Kernel B: STN = affine_grid + bilinear grid_sample (zeros padding).
# One bf16 one-hot [HW, HW] per bilinear corner, bilinear weight applied to the
# [C, HW] matmul result in f32 (validity-masked -> zero padding preserved).
# ----------------------------------------------------------------------------
def make_stn_kernel(H, W, C):
    HW = H * W

    def stn_kernel(theta_ref, img_ref, warp_ref, mask_ref):
        # theta_ref: SMEM (N, 6)   img_ref: (1, C, HW)
        # warp_ref: (1, C, HW)     mask_ref: (1, 1, HW)
        n = pl.program_id(0)
        t00 = theta_ref[n, 0]; t01 = theta_ref[n, 1]; t02 = theta_ref[n, 2]
        t10 = theta_ref[n, 3]; t11 = theta_ref[n, 4]; t12 = theta_ref[n, 5]

        # output pixel p -> sample coordinate (align_corners=False)
        p_idx = lax.broadcasted_iota(jnp.int32, (1, HW), 1)
        jj = (p_idx % W).astype(jnp.float32)
        ii = (p_idx // W).astype(jnp.float32)
        xb = (2.0 * jj + 1.0) / float(W) - 1.0
        yb = (2.0 * ii + 1.0) / float(H) - 1.0
        xs = t00 * xb + t01 * yb + t02
        ys = t10 * xb + t11 * yb + t12
        ix = ((xs + 1.0) * float(W) - 1.0) * 0.5
        iy = ((ys + 1.0) * float(H) - 1.0) * 0.5
        x0f = jnp.floor(ix); y0f = jnp.floor(iy)
        x0 = x0f.astype(jnp.int32); y0 = y0f.astype(jnp.int32)
        wx1 = ix - x0f; wx0 = 1.0 - wx1
        wy1 = iy - y0f; wy0 = 1.0 - wy1

        # source pixel q decomposed into (row, col): [HW, 1], loop-invariant, tiny.
        q_iota = lax.broadcasted_iota(jnp.int32, (HW, 1), 0)
        yq = q_iota // W
        xq = q_iota % W

        img_bf = img_ref[0].astype(jnp.bfloat16)          # [C, HW] (one-hot is exact)

        def corner(k, carry):
            # one corner per iteration -> only ONE [HW, HW] one-hot matrix live
            acc, msk = carry
            dy = k // 2
            dx = k - 2 * dy
            yc = y0 + dy                                   # [1, HW]
            xc = x0 + dx
            fy = dy.astype(jnp.float32)
            fx = dx.astype(jnp.float32)
            w = ((fy * wy1 + (1.0 - fy) * wy0) *
                 (fx * wx1 + (1.0 - fx) * wx0))            # [1, HW]
            valid = (xc >= 0) & (xc < W) & (yc >= 0) & (yc < H)
            wv = jnp.where(valid, w, 0.0)                  # zeros-padding semantics
            onehot = ((yq == yc) & (xq == xc)).astype(jnp.bfloat16)   # [HW, HW]
            contrib = jnp.dot(img_bf, onehot,
                              preferred_element_type=jnp.float32)     # [C, HW]
            return acc + contrib * wv, msk + wv

        acc, msk = lax.fori_loop(
            0, 4, corner,
            (jnp.zeros((C, HW), jnp.float32), jnp.zeros((1, HW), jnp.float32)))
        warp_ref[0] = acc
        mask_ref[0] = msk           # == warping an all-ones 1-channel image

    return stn_kernel


def stn_apply(imgs_flat, thetas, Himg, Wimg):
    N, C, HW = imgs_flat.shape
    kernel = make_stn_kernel(Himg, Wimg, C)
    warp, mask = pl.pallas_call(
        kernel,
        out_shape=(jax.ShapeDtypeStruct((N, C, HW), jnp.float32),
                   jax.ShapeDtypeStruct((N, 1, HW), jnp.float32)),
        grid=(N,),
        in_specs=[
            pl.BlockSpec(memory_space=pltpu.MemorySpace.SMEM),   # thetas (N, 6)
            pl.BlockSpec((1, C, HW), lambda n: (n, 0, 0)),
        ],
        out_specs=(
            pl.BlockSpec((1, C, HW), lambda n: (n, 0, 0)),
            pl.BlockSpec((1, 1, HW), lambda n: (n, 0, 0)),
        ),
        compiler_params=pltpu.CompilerParams(
            dimension_semantics=("parallel",)),                  # 2 TCs on v7x
    )(thetas, imgs_flat)
    return warp, mask


# ----------------------------------------------------------------------------
# Plain-JAX glue.
# ----------------------------------------------------------------------------
def im2col3x3_t(x, kpad):
    """NCHW, 3x3, pad=1, stride=1 -> [kpad, N*H*W] patches (pixels on lanes)."""
    N, Cin, H, W = x.shape
    xp = jnp.pad(x, ((0, 0), (0, 0), (1, 1), (1, 1)))
    cols = [xp[:, :, ky:ky + H, kx:kx + W] for ky in range(3) for kx in range(3)]
    p = jnp.stack(cols, axis=2)                                  # [N, Cin, 9, H, W]
    p = p.reshape(N, Cin * 9, H * W)                             # [N, K, HW]
    p = jnp.transpose(p, (1, 0, 2)).reshape(Cin * 9, N * H * W)  # [K, N*HW]
    return jnp.pad(p, ((0, kpad - Cin * 9), (0, 0)))


def make_pool_matrix(nf, hw):
    """[nf, nf*hw] block matrix: row f has 1/hw over frame f's pixel columns."""
    return jnp.repeat(jnp.eye(nf, dtype=jnp.float32) / float(hw), hw, axis=1)


def lrcn_forward(params, prefix, unstable):
    seq = list(prefix) + list(unstable)
    num_prefix = len(prefix)
    B, Cin, Himg, Wimg = seq[0].shape
    T = len(seq)
    U = len(unstable)
    HW = Himg * Wimg
    NF = T * B

    # all frames' im2col patches, lane-dense [Kpad, NF*HW]
    frames = jnp.stack(seq, axis=0).reshape(NF, Cin, Himg, Wimg)
    patches = im2col3x3_t(frames, kpad=params["wc"].shape[1])
    poolm = make_pool_matrix(NF, HW)

    # fused CNN+pool -> LSTM(+mean) -> fc_loc ; thetas lane-padded then sliced
    theta_pad = fused_theta(patches, poolm, params, T_pre=num_prefix, B=B, U=U)
    thetas = theta_pad[:, :6]                                    # [U*B, 6]

    # STN warp of the unstable images and of an all-ones mask image
    un_imgs = jnp.stack(unstable, axis=0).reshape(U * B, Cin, HW)
    warp, mask = stn_apply(un_imgs, thetas, Himg, Wimg)
    warp = warp.reshape(U, B, Cin, Himg, Wimg)
    mask = mask.reshape(U, B, 1, Himg, Wimg)
    thetas_out = thetas.reshape(U, B, 6)

    warpped_list = [warp[i] for i in range(U)]
    mask_list = [mask[i] for i in range(U)]
    theta_list = [thetas_out[i] for i in range(U)]
    return warpped_list, mask_list, theta_list


# ----------------------------------------------------------------------------
# Deterministic parameter construction (shapes from LRCNModel.__init__).
# ----------------------------------------------------------------------------
def make_params(key, c_feat, rnn_chn):
    ks = jax.random.split(key, 8)
    conv_w = 0.1 * jax.random.normal(ks[0], (c_feat, 3, 3, 3), jnp.float32)
    conv_b = 0.1 * jax.random.normal(ks[1], (c_feat,), jnp.float32)
    wih = 0.1 * jax.random.normal(ks[2], (4 * rnn_chn, c_feat), jnp.float32)
    whh = 0.1 * jax.random.normal(ks[3], (4 * rnn_chn, rnn_chn), jnp.float32)
    b_ih = 0.1 * jax.random.normal(ks[4], (4 * rnn_chn,), jnp.float32)
    b_hh = 0.1 * jax.random.normal(ks[5], (4 * rnn_chn,), jnp.float32)
    w1 = 0.1 * jax.random.normal(ks[6], (rnn_chn, rnn_chn + c_feat), jnp.float32)
    b1 = 0.1 * jax.random.normal(ks[7], (rnn_chn,), jnp.float32)
    w2 = jnp.zeros((6, rnn_chn), jnp.float32)                 # fc_loc[-1].weight.fill_(0)
    b2 = jnp.array([1., 0., 0., 0., 1., 0.], jnp.float32)     # fc_loc[-1].bias

    K = conv_w.shape[1] * 9
    kpad = -(-K // 8) * 8                                     # pad K to sublane multiple
    wc = jnp.pad(conv_w.reshape(c_feat, -1), ((0, 0), (0, kpad - K)))   # [Cf, Kpad]
    w1_t = w1.T                                               # [Cf+H, H]
    w2_t = jnp.pad(w2.T, ((0, 0), (0, THETA_PAD - 6)))        # [H, 128] lane-padded
    b2_p = jnp.pad(b2[None, :], ((0, 0), (0, THETA_PAD - 6))) # [1, 128]
    return {
        "wc": wc,                                             # [Cf, Kpad]
        "bc": conv_b[:, None],                                # [Cf, 1]
        "wih_t": wih.T,                                       # [Cf, 4H]
        "whh_t": whh.T,                                       # [H, 4H]
        "b_lstm": (b_ih + b_hh)[None, :],                     # [1, 4H]
        "w1a_t": w1_t[:c_feat],                               # [Cf, H]   (unstable part)
        "w1b_t": w1_t[c_feat:],                               # [H, H]    (avg part)
        "b1": b1[None, :],                                    # [1, H]
        "w2_t": w2_t,                                         # [H, 128]
        "b2": b2_p,                                           # [1, 128]
    }


if __name__ == "__main__":
    B, H, W = 2, 16, 16
    NUM_PREFIX, NUM_UNSTABLE = 4, 2
    C_FEAT, RNN_CHN = 16, 32          # rnn_input_dim=16, rnn_chn=32, rnn_layers=1

    key = jax.random.PRNGKey(0)
    pkey, dkey = jax.random.split(key)
    params = make_params(pkey, C_FEAT, RNN_CHN)

    frame_keys = jax.random.split(dkey, NUM_PREFIX + NUM_UNSTABLE)
    prefix = [jax.random.normal(frame_keys[i], (B, 3, H, W), jnp.float32)
              for i in range(NUM_PREFIX)]
    unstable = [jax.random.normal(frame_keys[NUM_PREFIX + i], (B, 3, H, W), jnp.float32)
                for i in range(NUM_UNSTABLE)]

    warpped, mask, thetas = lrcn_forward(params, prefix, unstable)
    for t in warpped + mask + thetas:
        jax.block_until_ready(t)
    print("KERNEL_OK")
</pallas_src>

<mosaic_0001>
module attributes {stable_mosaic.version = 11 : i64} {
  func.func @kernel(%arg0: i32, %arg1: memref<32x3072xf32, #tpu.memory_space<vmem>>, %arg2: memref<12x3072xf32, #tpu.memory_space<vmem>>, %arg3: memref<16x32xf32, #tpu.memory_space<vmem>>, %arg4: memref<16x1xf32, #tpu.memory_space<vmem>>, %arg5: memref<16x128xf32, #tpu.memory_space<vmem>>, %arg6: memref<32x128xf32, #tpu.memory_space<vmem>>, %arg7: memref<1x128xf32, #tpu.memory_space<vmem>>, %arg8: memref<16x32xf32, #tpu.memory_space<vmem>>, %arg9: memref<32x32xf32, #tpu.memory_space<vmem>>, %arg10: memref<1x32xf32, #tpu.memory_space<vmem>>, %arg11: memref<32x128xf32, #tpu.memory_space<vmem>>, %arg12: memref<1x128xf32, #tpu.memory_space<vmem>>, %arg13: memref<4x128xf32, #tpu.memory_space<vmem>>) attributes {dimension_semantics = [#tpu.dimension_semantics<arbitrary>], iteration_bounds = array<i64: 1>, scalar_prefetch = 0 : i64, scratch_operands = 0 : i64, tpu.core_type = #tpu.core_type<tc>, window_params = [{pipeline_mode = #tpu.pipeline_mode<synchronous>, transform_indices = @transform_0, window_bounds = array<i64: 32, 3072>}, {pipeline_mode = #tpu.pipeline_mode<synchronous>, transform_indices = @transform_1, window_bounds = array<i64: 12, 3072>}, {pipeline_mode = #tpu.pipeline_mode<synchronous>, transform_indices = @transform_2, window_bounds = array<i64: 16, 32>}, {pipeline_mode = #tpu.pipeline_mode<synchronous>, transform_indices = @transform_3, window_bounds = array<i64: 16, 1>}, {pipeline_mode = #tpu.pipeline_mode<synchronous>, transform_indices = @transform_4, window_bounds = array<i64: 16, 128>}, {pipeline_mode = #tpu.pipeline_mode<synchronous>, transform_indices = @transform_5, window_bounds = array<i64: 32, 128>}, {pipeline_mode = #tpu.pipeline_mode<synchronous>, transform_indices = @transform_6, window_bounds = array<i64: 1, 128>}, {pipeline_mode = #tpu.pipeline_mode<synchronous>, transform_indices = @transform_7, window_bounds = array<i64: 16, 32>}, {pipeline_mode = #tpu.pipeline_mode<synchronous>, transform_indices = @transform_8, window_bounds = array<i64: 32, 32>}, {pipeline_mode = #tpu.pipeline_mode<synchronous>, transform_indices = @transform_9, window_bounds = array<i64: 1, 32>}, {pipeline_mode = #tpu.pipeline_mode<synchronous>, transform_indices = @transform_10, window_bounds = array<i64: 32, 128>}, {pipeline_mode = #tpu.pipeline_mode<synchronous>, transform_indices = @transform_11, window_bounds = array<i64: 1, 128>}, {pipeline_mode = #tpu.pipeline_mode<synchronous>, transform_indices = @transform_12, window_bounds = array<i64: 4, 128>}]} {
    %c0 = arith.constant 0 : index
    %c0_0 = arith.constant 0 : index
    %0 = vector.load %arg3[%c0, %c0_0] : memref<16x32xf32, #tpu.memory_space<vmem>>, vector<16x32xf32>
    %c0_1 = arith.constant 0 : index
    %c0_2 = arith.constant 0 : index
    %1 = vector.load %arg1[%c0_1, %c0_2] : memref<32x3072xf32, #tpu.memory_space<vmem>>, vector<32x3072xf32>
    %cst = arith.constant dense<0.000000e+00> : vector<16x3072xf32>
    %2 = tpu.matmul %0, %1, %cst {dimension_numbers = #tpu.dot_dimension_numbers<[1], [0], [0], [1], [0, 0, 1, 1], [], []>} : vector<16x32xf32>, vector<32x3072xf32>, vector<16x3072xf32> -> vector<16x3072xf32>
    %c0_3 = arith.constant 0 : index
    %c0_4 = arith.constant 0 : index
    %3 = vector.load %arg4[%c0_3, %c0_4] : memref<16x1xf32, #tpu.memory_space<vmem>>, vector<16x1xf32>
    %4 = vector.broadcast %3 : vector<16x1xf32> to vector<16x3072xf32>
    %5 = arith.addf %2, %4 : vector<16x3072xf32>
    %cst_5 = arith.constant 0.000000e+00 : f32
    %6 = vector.broadcast %cst_5 : f32 to vector<16x3072xf32>
    %7 = arith.maximumf %5, %6 : vector<16x3072xf32>
    %c0_6 = arith.constant 0 : index
    %c0_7 = arith.constant 0 : index
    %8 = vector.load %arg2[%c0_6, %c0_7] : memref<12x3072xf32, #tpu.memory_space<vmem>>, vector<12x3072xf32>
    %cst_8 = arith.constant dense<0.000000e+00> : vector<12x16xf32>
    %9 = tpu.matmul %8, %7, %cst_8 {dimension_numbers = #tpu.dot_dimension_numbers<[1], [1], [0], [0], [0, 0, 1, 0], [], []>} : vector<12x3072xf32>, vector<16x3072xf32>, vector<12x16xf32> -> vector<12x16xf32>
    %10 = vector.extract_strided_slice %9 {offsets = [0, 0], sizes = [8, 16], strides = [1, 1]} : vector<12x16xf32> to vector<8x16xf32>
    %c0_9 = arith.constant 0 : index
    %c0_10 = arith.constant 0 : index
    %11 = vector.load %arg5[%c0_9, %c0_10] : memref<16x128xf32, #tpu.memory_space<vmem>>, vector<16x128xf32>
    %cst_11 = arith.constant dense<0.000000e+00> : vector<8x128xf32>
    %12 = tpu.matmul %10, %11, %cst_11 {dimension_numbers = #tpu.dot_dimension_numbers<[1], [0], [0], [1], [0, 0, 1, 1], [], []>} : vector<8x16xf32>, vector<16x128xf32>, vector<8x128xf32> -> vector<8x128xf32>
    %c0_12 = arith.constant 0 : index
    %c0_13 = arith.constant 0 : index
    %13 = vector.load %arg7[%c0_12, %c0_13] : memref<1x128xf32, #tpu.memory_space<vmem>>, vector<1x128xf32>
    %14 = vector.broadcast %13 : vector<1x128xf32> to vector<8x128xf32>
    %15 = arith.addf %12, %14 : vector<8x128xf32>
    %cst_14 = arith.constant 0.000000e+00 : f32
    %16 = vector.broadcast %cst_14 : f32 to vector<2x32xf32>
    %cst_15 = arith.constant 0.000000e+00 : f32
    %17 = vector.broadcast %cst_15 : f32 to vector<2x32xf32>
    %cst_16 = arith.constant 0.000000e+00 : f32
    %18 = vector.broadcast %cst_16 : f32 to vector<2x32xf32>
    %19 = vector.extract_strided_slice %15 {offsets = [0, 0], sizes = [2, 128], strides = [1, 1]} : vector<8x128xf32> to vector<2x128xf32>
    %c0_17 = arith.constant 0 : index
    %c0_18 = arith.constant 0 : index
    %20 = vector.load %arg6[%c0_17, %c0_18] : memref<32x128xf32, #tpu.memory_space<vmem>>, vector<32x128xf32>
    %cst_19 = arith.constant dense<0.000000e+00> : vector<2x128xf32>
    %21 = tpu.matmul %16, %20, %cst_19 {dimension_numbers = #tpu.dot_dimension_numbers<[1], [0], [0], [1], [0, 0, 1, 1], [], []>} : vector<2x32xf32>, vector<32x128xf32>, vector<2x128xf32> -> vector<2x128xf32>
    %22 = arith.addf %19, %21 : vector<2x128xf32>
    %23 = vector.extract_strided_slice %22 {offsets = [0, 0], sizes = [2, 64], strides = [1, 1]} : vector<2x128xf32> to vector<2x64xf32>
    %24 = arith.negf %23 : vector<2x64xf32>
    %25 = math.exp %24 : vector<2x64xf32>
    %cst_20 = arith.constant 1.000000e+00 : f32
    %26 = vector.broadcast %cst_20 : f32 to vector<2x64xf32>
    %27 = arith.addf %26, %25 : vector<2x64xf32>
    %28 = arith.divf %26, %27 : vector<2x64xf32>
    %29 = vector.extract_strided_slice %22 {offsets = [0, 64], sizes = [2, 32], strides = [1, 1]} : vector<2x128xf32> to vector<2x32xf32>
    %30 = math.tanh %29 : vector<2x32xf32>
    %31 = vector.extract_strided_slice %22 {offsets = [0, 96], sizes = [2, 32], strides = [1, 1]} : vector<2x128xf32> to vector<2x32xf32>
    %32 = arith.negf %31 : vector<2x32xf32>
    %33 = math.exp %32 : vector<2x32xf32>
    %cst_21 = arith.constant 1.000000e+00 : f32
    %34 = vector.broadcast %cst_21 : f32 to vector<2x32xf32>
    %35 = arith.addf %34, %33 : vector<2x32xf32>
    %36 = arith.divf %34, %35 : vector<2x32xf32>
    %37 = vector.extract_strided_slice %28 {offsets = [0, 32], sizes = [2, 32], strides = [1, 1]} : vector<2x64xf32> to vector<2x32xf32>
    %38 = arith.mulf %37, %17 : vector<2x32xf32>
    %39 = vector.extract_strided_slice %28 {offsets = [0, 0], sizes = [2, 32], strides = [1, 1]} : vector<2x64xf32> to vector<2x32xf32>
    %40 = arith.mulf %39, %30 : vector<2x32xf32>
    %41 = arith.addf %38, %40 : vector<2x32xf32>
    %42 = math.tanh %41 : vector<2x32xf32>
    %43 = arith.mulf %36, %42 : vector<2x32xf32>
    %44 = arith.addf %18, %43 : vector<2x32xf32>
    %45 = vector.extract_strided_slice %15 {offsets = [2, 0], sizes = [2, 128], strides = [1, 1]} : vector<8x128xf32> to vector<2x128xf32>
    %c0_22 = arith.constant 0 : index
    %c0_23 = arith.constant 0 : index
    %46 = vector.load %arg6[%c0_22, %c0_23] : memref<32x128xf32, #tpu.memory_space<vmem>>, vector<32x128xf32>
    %cst_24 = arith.constant dense<0.000000e+00> : vector<2x128xf32>
    %47 = tpu.matmul %43, %46, %cst_24 {dimension_numbers = #tpu.dot_dimension_numbers<[1], [0], [0], [1], [0, 0, 1, 1], [], []>} : vector<2x32xf32>, vector<32x128xf32>, vector<2x128xf32> -> vector<2x128xf32>
    %48 = arith.addf %45, %47 : vector<2x128xf32>
    %49 = vector.extract_strided_slice %48 {offsets = [0, 0], sizes = [2, 64], strides = [1, 1]} : vector<2x128xf32> to vector<2x64xf32>
    %50 = arith.negf %49 : vector<2x64xf32>
    %51 = math.exp %50 : vector<2x64xf32>
    %cst_25 = arith.constant 1.000000e+00 : f32
    %52 = vector.broadcast %cst_25 : f32 to vector<2x64xf32>
    %53 = arith.addf %52, %51 : vector<2x64xf32>
    %54 = arith.divf %52, %53 : vector<2x64xf32>
    %55 = vector.extract_strided_slice %48 {offsets = [0, 64], sizes = [2, 32], strides = [1, 1]} : vector<2x128xf32> to vector<2x32xf32>
    %56 = math.tanh %55 : vector<2x32xf32>
    %57 = vector.extract_strided_slice %48 {offsets = [0, 96], sizes = [2, 32], strides = [1, 1]} : vector<2x128xf32> to vector<2x32xf32>
    %58 = arith.negf %57 : vector<2x32xf32>
    %59 = math.exp %58 : vector<2x32xf32>
    %cst_26 = arith.constant 1.000000e+00 : f32
    %60 = vector.broadcast %cst_26 : f32 to vector<2x32xf32>
    %61 = arith.addf %60, %59 : vector<2x32xf32>
    %62 = arith.divf %60, %61 : vector<2x32xf32>
    %63 = vector.extract_strided_slice %54 {offsets = [0, 32], sizes = [2, 32], strides = [1, 1]} : vector<2x64xf32> to vector<2x32xf32>
    %64 = arith.mulf %63, %41 : vector<2x32xf32>
    %65 = vector.extract_strided_slice %54 {offsets = [0, 0], sizes = [2, 32], strides = [1, 1]} : vector<2x64xf32> to vector<2x32xf32>
    %66 = arith.mulf %65, %56 : vector<2x32xf32>
    %67 = arith.addf %64, %66 : vector<2x32xf32>
    %68 = math.tanh %67 : vector<2x32xf32>
    %69 = arith.mulf %62, %68 : vector<2x32xf32>
    %70 = arith.addf %44, %69 : vector<2x32xf32>
    %71 = vector.extract_strided_slice %15 {offsets = [4, 0], sizes = [2, 128], strides = [1, 1]} : vector<8x128xf32> to vector<2x128xf32>
    %c0_27 = arith.constant 0 : index
    %c0_28 = arith.constant 0 : index
    %72 = vector.load %arg6[%c0_27, %c0_28] : memref<32x128xf32, #tpu.memory_space<vmem>>, vector<32x128xf32>
    %cst_29 = arith.constant dense<0.000000e+00> : vector<2x128xf32>
    %73 = tpu.matmul %69, %72, %cst_29 {dimension_numbers = #tpu.dot_dimension_numbers<[1], [0], [0], [1], [0, 0, 1, 1], [], []>} : vector<2x32xf32>, vector<32x128xf32>, vector<2x128xf32> -> vector<2x128xf32>
    %74 = arith.addf %71, %73 : vector<2x128xf32>
    %75 = vector.extract_strided_slice %74 {offsets = [0, 0], sizes = [2, 64], strides = [1, 1]} : vector<2x128xf32> to vector<2x64xf32>
    %76 = arith.negf %75 : vector<2x64xf32>
    %77 = math.exp %76 : vector<2x64xf32>
    %cst_30 = arith.constant 1.000000e+00 : f32
    %78 = vector.broadcast %cst_30 : f32 to vector<2x64xf32>
    %79 = arith.addf %78, %77 : vector<2x64xf32>
    %80 = arith.divf %78, %79 : vector<2x64xf32>
    %81 = vector.extract_strided_slice %74 {offsets = [0, 64], sizes = [2, 32], strides = [1, 1]} : vector<2x128xf32> to vector<2x32xf32>
    %82 = math.tanh %81 : vector<2x32xf32>
    %83 = vector.extract_strided_slice %74 {offsets = [0, 96], sizes = [2, 32], strides = [1, 1]} : vector<2x128xf32> to vector<2x32xf32>
    %84 = arith.negf %83 : vector<2x32xf32>
    %85 = math.exp %84 : vector<2x32xf32>
    %cst_31 = arith.constant 1.000000e+00 : f32
    %86 = vector.broadcast %cst_31 : f32 to vector<2x32xf32>
    %87 = arith.addf %86, %85 : vector<2x32xf32>
    %88 = arith.divf %86, %87 : vector<2x32xf32>
    %89 = vector.extract_strided_slice %80 {offsets = [0, 32], sizes = [2, 32], strides = [1, 1]} : vector<2x64xf32> to vector<2x32xf32>
    %90 = arith.mulf %89, %67 : vector<2x32xf32>
    %91 = vector.extract_strided_slice %80 {offsets = [0, 0], sizes = [2, 32], strides = [1, 1]} : vector<2x64xf32> to vector<2x32xf32>
    %92 = arith.mulf %91, %82 : vector<2x32xf32>
    %93 = arith.addf %90, %92 : vector<2x32xf32>
    %94 = math.tanh %93 : vector<2x32xf32>
    %95 = arith.mulf %88, %94 : vector<2x32xf32>
    %96 = arith.addf %70, %95 : vector<2x32xf32>
    %97 = vector.extract_strided_slice %15 {offsets = [6, 0], sizes = [2, 128], strides = [1, 1]} : vector<8x128xf32> to vector<2x128xf32>
    %c0_32 = arith.constant 0 : index
    %c0_33 = arith.constant 0 : index
    %98 = vector.load %arg6[%c0_32, %c0_33] : memref<32x128xf32, #tpu.memory_space<vmem>>, vector<32x128xf32>
    %cst_34 = arith.constant dense<0.000000e+00> : vector<2x128xf32>
    %99 = tpu.matmul %95, %98, %cst_34 {dimension_numbers = #tpu.dot_dimension_numbers<[1], [0], [0], [1], [0, 0, 1, 1], [], []>} : vector<2x32xf32>, vector<32x128xf32>, vector<2x128xf32> -> vector<2x128xf32>
    %100 = arith.addf %97, %99 : vector<2x128xf32>
    %101 = vector.extract_strided_slice %100 {offsets = [0, 0], sizes = [2, 64], strides = [1, 1]} : vector<2x128xf32> to vector<2x64xf32>
    %102 = arith.negf %101 : vector<2x64xf32>
    %103 = math.exp %102 : vector<2x64xf32>
    %cst_35 = arith.constant 1.000000e+00 : f32
    %104 = vector.broadcast %cst_35 : f32 to vector<2x64xf32>
    %105 = arith.addf %104, %103 : vector<2x64xf32>
    %106 = arith.divf %104, %105 : vector<2x64xf32>
    %107 = vector.extract_strided_slice %100 {offsets = [0, 64], sizes = [2, 32], strides = [1, 1]} : vector<2x128xf32> to vector<2x32xf32>
    %108 = math.tanh %107 : vector<2x32xf32>
    %109 = vector.extract_strided_slice %100 {offsets = [0, 96], sizes = [2, 32], strides = [1, 1]} : vector<2x128xf32> to vector<2x32xf32>
    %110 = arith.negf %109 : vector<2x32xf32>
    %111 = math.exp %110 : vector<2x32xf32>
    %cst_36 = arith.constant 1.000000e+00 : f32
    %112 = vector.broadcast %cst_36 : f32 to vector<2x32xf32>
    %113 = arith.addf %112, %111 : vector<2x32xf32>
    %114 = arith.divf %112, %113 : vector<2x32xf32>
    %115 = vector.extract_strided_slice %106 {offsets = [0, 32], sizes = [2, 32], strides = [1, 1]} : vector<2x64xf32> to vector<2x32xf32>
    %116 = arith.mulf %115, %93 : vector<2x32xf32>
    %117 = vector.extract_strided_slice %106 {offsets = [0, 0], sizes = [2, 32], strides = [1, 1]} : vector<2x64xf32> to vector<2x32xf32>
    %118 = arith.mulf %117, %108 : vector<2x32xf32>
    %119 = arith.addf %116, %118 : vector<2x32xf32>
    %120 = math.tanh %119 : vector<2x32xf32>
    %121 = arith.mulf %114, %120 : vector<2x32xf32>
    %122 = arith.addf %96, %121 : vector<2x32xf32>
    %cst_37 = arith.constant 2.500000e-01 : f32
    %123 = vector.broadcast %cst_37 : f32 to vector<2x32xf32>
    %124 = arith.mulf %122, %123 : vector<2x32xf32>
    %125 = vector.extract_strided_slice %9 {offsets = [8, 0], sizes = [4, 16], strides = [1, 1]} : vector<12x16xf32> to vector<4x16xf32>
    %126 = tpu.concatenate %124, %124 in 0 : vector<2x32xf32>, vector<2x32xf32> -> vector<4x32xf32>
    %c0_38 = arith.constant 0 : index
    %c0_39 = arith.constant 0 : index
    %127 = vector.load %arg8[%c0_38, %c0_39] : memref<16x32xf32, #tpu.memory_space<vmem>>, vector<16x32xf32>
    %cst_40 = arith.constant dense<0.000000e+00> : vector<4x32xf32>
    %128 = tpu.matmul %125, %127, %cst_40 {dimension_numbers = #tpu.dot_dimension_numbers<[1], [0], [0], [1], [0, 0, 1, 1], [], []>} : vector<4x16xf32>, vector<16x32xf32>, vector<4x32xf32> -> vector<4x32xf32>
    %c0_41 = arith.constant 0 : index
    %c0_42 = arith.constant 0 : index
    %129 = vector.load %arg9[%c0_41, %c0_42] : memref<32x32xf32, #tpu.memory_space<vmem>>, vector<32x32xf32>
    %cst_43 = arith.constant dense<0.000000e+00> : vector<4x32xf32>
    %130 = tpu.matmul %126, %129, %cst_43 {dimension_numbers = #tpu.dot_dimension_numbers<[1], [0], [0], [1], [0, 0, 1, 1], [], []>} : vector<4x32xf32>, vector<32x32xf32>, vector<4x32xf32> -> vector<4x32xf32>
    %131 = arith.addf %128, %130 : vector<4x32xf32>
    %c0_44 = arith.constant 0 : index
    %c0_45 = arith.constant 0 : index
    %132 = vector.load %arg10[%c0_44, %c0_45] : memref<1x32xf32, #tpu.memory_space<vmem>>, vector<1x32xf32>
    %133 = vector.broadcast %132 : vector<1x32xf32> to vector<4x32xf32>
    %134 = arith.addf %131, %133 : vector<4x32xf32>
    %cst_46 = arith.constant 0.000000e+00 : f32
    %135 = vector.broadcast %cst_46 : f32 to vector<4x32xf32>
    %136 = arith.maximumf %134, %135 : vector<4x32xf32>
    %c0_47 = arith.constant 0 : index
    %c0_48 = arith.constant 0 : index
    %137 = vector.load %arg11[%c0_47, %c0_48] : memref<32x128xf32, #tpu.memory_space<vmem>>, vector<32x128xf32>
    %cst_49 = arith.constant dense<0.000000e+00> : vector<4x128xf32>
    %138 = tpu.matmul %136, %137, %cst_49 {dimension_numbers = #tpu.dot_dimension_numbers<[1], [0], [0], [1], [0, 0, 1, 1], [], []>} : vector<4x32xf32>, vector<32x128xf32>, vector<4x128xf32> -> vector<4x128xf32>
    %c0_50 = arith.constant 0 : index
    %c0_51 = arith.constant 0 : index
    %139 = vector.load %arg12[%c0_50, %c0_51] : memref<1x128xf32, #tpu.memory_space<vmem>>, vector<1x128xf32>
    %140 = vector.broadcast %139 : vector<1x128xf32> to vector<4x128xf32>
    %141 = arith.addf %138, %140 : vector<4x128xf32>
    %c0_52 = arith.constant 0 : index
    %c0_53 = arith.constant 0 : index
    %142 = vector.load %arg13[%c0_52, %c0_53] : memref<4x128xf32, #tpu.memory_space<vmem>>, vector<4x128xf32>
    tpu.vector_store %arg13[%c0_52, %c0_53], %141 {strides = array<i32>} : memref<4x128xf32, #tpu.memory_space<vmem>>, vector<4x128xf32>,
    return
  }
  func.func @transform_0(%arg0: i32) -> (i32, i32) {
    %c0_i32 = arith.constant 0 : i32
    %c0_i32_0 = arith.constant 0 : i32
    %c0_i32_1 = arith.constant 0 : i32
    return %c0_i32, %c0_i32_0 : i32, i32
  }
  func.func @transform_1(%arg0: i32) -> (i32, i32) {
    %c0_i32 = arith.constant 0 : i32
    %c0_i32_0 = arith.constant 0 : i32
    %c0_i32_1 = arith.constant 0 : i32
    return %c0_i32, %c0_i32_0 : i32, i32
  }
  func.func @transform_2(%arg0: i32) -> (i32, i32) {
    %c0_i32 = arith.constant 0 : i32
    %c0_i32_0 = arith.constant 0 : i32
    %c0_i32_1 = arith.constant 0 : i32
    return %c0_i32, %c0_i32_0 : i32, i32
  }
  func.func @transform_3(%arg0: i32) -> (i32, i32) {
    %c0_i32 = arith.constant 0 : i32
    %c0_i32_0 = arith.constant 0 : i32
    %c0_i32_1 = arith.constant 0 : i32
    return %c0_i32, %c0_i32_0 : i32, i32
  }
  func.func @transform_4(%arg0: i32) -> (i32, i32) {
    %c0_i32 = arith.constant 0 : i32
    %c0_i32_0 = arith.constant 0 : i32
    %c0_i32_1 = arith.constant 0 : i32
    return %c0_i32, %c0_i32_0 : i32, i32
  }
  func.func @transform_5(%arg0: i32) -> (i32, i32) {
    %c0_i32 = arith.constant 0 : i32
    %c0_i32_0 = arith.constant 0 : i32
    %c0_i32_1 = arith.constant 0 : i32
    return %c0_i32, %c0_i32_0 : i32, i32
  }
  func.func @transform_6(%arg0: i32) -> (i32, i32) {
    %c0_i32 = arith.constant 0 : i32
    %c0_i32_0 = arith.constant 0 : i32
    %c0_i32_1 = arith.constant 0 : i32
    return %c0_i32, %c0_i32_0 : i32, i32
  }
  func.func @transform_7(%arg0: i32) -> (i32, i32) {
    %c0_i32 = arith.constant 0 : i32
    %c0_i32_0 = arith.constant 0 : i32
    %c0_i32_1 = arith.constant 0 : i32
    return %c0_i32, %c0_i32_0 : i32, i32
  }
  func.func @transform_8(%arg0: i32) -> (i32, i32) {
    %c0_i32 = arith.constant 0 : i32
    %c0_i32_0 = arith.constant 0 : i32
    %c0_i32_1 = arith.constant 0 : i32
    return %c0_i32, %c0_i32_0 : i32, i32
  }
  func.func @transform_9(%arg0: i32) -> (i32, i32) {
    %c0_i32 = arith.constant 0 : i32
    %c0_i32_0 = arith.constant 0 : i32
    %c0_i32_1 = arith.constant 0 : i32
    return %c0_i32, %c0_i32_0 : i32, i32
  }
  func.func @transform_10(%arg0: i32) -> (i32, i32) {
    %c0_i32 = arith.constant 0 : i32
    %c0_i32_0 = arith.constant 0 : i32
    %c0_i32_1 = arith.constant 0 : i32
    return %c0_i32, %c0_i32_0 : i32, i32
  }
  func.func @transform_11(%arg0: i32) -> (i32, i32) {
    %c0_i32 = arith.constant 0 : i32
    %c0_i32_0 = arith.constant 0 : i32
    %c0_i32_1 = arith.constant 0 : i32
    return %c0_i32, %c0_i32_0 : i32, i32
  }
  func.func @transform_12(%arg0: i32) -> (i32, i32) {
    %c0_i32 = arith.constant 0 : i32
    %c0_i32_0 = arith.constant 0 : i32
    %c0_i32_1 = arith.constant 0 : i32
    return %c0_i32, %c0_i32_0 : i32, i32
  }
}

</mosaic_0001>

<bundles_post_ra>
// kernel: tpu_custom_call.1
= control target key start
LH: loop header
LB: loop body
LE: loop exit
PB: predicated region body
PF: predicated region fallthrough
CT: control target
= control target key end

     0   :  { %17 = vsyncpa [#allocation3], 0  ;;  %s4040_s0 = inlined_call_operand.hbm [shape: f32[32,3072], index: 0, kind: input, shape index: {}]   ;;  %s4041_s1 = inlined_call_operand.hbm [shape: f32[12,3072], index: 1, kind: input, shape index: {}]   ;;  %s4042_s2 = inlined_call_operand.hbm [shape: f32[16,32], index: 2, kind: input, shape index: {}]   ;;  %s4043_s3 = inlined_call_operand.vmem [shape: f32[16,1], index: 3, kind: input, shape index: {}]   ;;  %s4044_s4 = inlined_call_operand.hbm [shape: f32[16,128], index: 4, kind: input, shape index: {}]   ;;  %s4045_s5 = inlined_call_operand.vmem [shape: f32[32,128], index: 5, kind: input, shape index: {}]   ;;  %s4046_s6 = inlined_call_operand.vmem [shape: f32[1,128], index: 6, kind: input, shape index: {}]   ;;  %s4047_s7 = inlined_call_operand.hbm [shape: f32[16,32], index: 7, kind: input, shape index: {}]   ;;  %s4048_s8 = inlined_call_operand.hbm [shape: f32[32,32], index: 8, kind: input, shape index: {}]   ;;  %s4049_s9 = inlined_call_operand.vmem [shape: f32[1,32], index: 9, kind: input, shape index: {}]   ;;  %s4050_s10 = inlined_call_operand.hbm [shape: f32[32,128], index: 10, kind: input, shape index: {}]   ;;  %s4051_s11 = inlined_call_operand.vmem [shape: f32[1,128], index: 11, kind: input, shape index: {}]   ;;  %s4052_s12 = inlined_call_operand.hbm [shape: f32[4,128], index: 12, kind: output, shape index: {}]  }
   0x1   :  { %18 = vsyncpa [#allocation6], 0 }
   0x2   :  { %19 = vsyncpa [#allocation9], 0 }
   0x3   :  { %20 = vsyncpa [#allocation12], 0 }
   0x4   :  { %21 = vsyncpa [#allocation4], 0  ;;  %s3582_s21 = smov [#allocation5]   ;;  %s3396_s25 = scalar_lea.hbm %s4041_s1, 6144 }
   0x5   :  { %s39_s22 = sshll.u32 %s3582_s21, 4  ;;  %p3397_p0 = scmp.ne.s32.totalorder %s4041_s1, %s3396_s25  ;;  %s40_s22 = int_to_ptr.vmem [resolvable:$true] %s39_s22 }
   0x6   :  { %p3400_p1 = scmp.lt.u32.totalorder %s3396_s25, %s4041_s1 }
   0x8   :  { %p3402_p2 = pnand %p3400_p1, %p3397_p0 }
   0xa   :  { %3405 = shalt.err (!%p3402_p2)
}
   0xb   :  { %s3406_s30 = scalar_lea.vmem %s40_s22, 6144  ;;  %p3411_p4 = scmp.lt.s32.totalorder %s40_s22, %s40_s22 }
   0xc   :  { %p3407_p3 = scmp.ne.s32.totalorder %s40_s22, %s3406_s30  ;;  %p3412_p5 = scmp.lt.s32.totalorder %s3406_s30, %s3406_s30 }
   0xe   :  { %p3413_p6 = por %p3412_p5, %p3411_p4 }
  0x10   :  { %p3414_p7 = pnand %p3413_p6, %p3407_p3 }
  0x12   :  { %3417 = shalt.err (!%p3414_p7)
}
  0x13   :  { %s3583_s13 = smov 3072   ;;  %s3584_s14 = smov 192  }
  0x14   :  { %45 = dma.hbm_to_vmem [thread:$0]  %s4041_s1, 6144, %s40_s22, [#allocation6], %s3583_s13, %s3583_s13, %s3584_s14  }
  0x15   :  { %s3585_s17 = smov [#allocation8]   ;;  %s3586_s19 = smov [#allocation11]  }
  0x16   :  { %s65_s18 = sshll.u32 %s3585_s17, 4  ;;  %s93_s20 = sshll.u32 %s3586_s19, 4  ;;  %s66_s18 = int_to_ptr.vmem [resolvable:$true] %s65_s18  ;;  %s94_s20 = int_to_ptr.vmem [resolvable:$true] %s93_s20 }
  0x17   :  { %s3418_s24 = scalar_lea.hbm %s4044_s4, 256 }
  0x18   :  { %p3419_p8 = scmp.ne.s32.totalorder %s4044_s4, %s3418_s24  ;;  %p3422_p9 = scmp.lt.u32.totalorder %s3418_s24, %s4044_s4 }
  0x1a   :  { %p3424_p10 = pnand %p3422_p9, %p3419_p8 }
  0x1c   :  { %3427 = shalt.err (!%p3424_p10)
}
  0x1d   :  { %s3428_s1 = scalar_lea.vmem %s66_s18, 256  ;;  %p3433_p12 = scmp.lt.s32.totalorder %s66_s18, %s66_s18 }
  0x1e   :  { %p3429_p11 = scmp.ne.s32.totalorder %s66_s18, %s3428_s1  ;;  %p3434_p13 = scmp.lt.s32.totalorder %s3428_s1, %s3428_s1 }
  0x20   :  { %p3435_p0 = por %p3434_p13, %p3433_p12 }
  0x22   :  { %p3436_p1 = pnand %p3435_p0, %p3429_p11 }
  0x24   :  { %3439 = shalt.err (!%p3436_p1)
}
  0x25   :  { %s3587_s22 = smov 128   ;;  %s3588_s29 = smov 8  }
  0x26   :  { %71 = dma.hbm_to_vmem [thread:$0]  %s4044_s4, 256, %s66_s18, [#allocation9], %s3587_s22, %s3587_s22, %s3588_s29  }
  0x27   :  { %s3440_s19 = scalar_lea.hbm %s4048_s8, 512 }
  0x28   :  { %p3441_p2 = scmp.ne.s32.totalorder %s4048_s8, %s3440_s19  ;;  %p3444_p3 = scmp.lt.u32.totalorder %s3440_s19, %s4048_s8 }
  0x2a   :  { %p3446_p4 = pnand %p3444_p3, %p3441_p2 }
  0x2c   :  { %3449 = shalt.err (!%p3446_p4)
}
  0x2d   :  { %s3450_s26 = scalar_lea.vmem %s94_s20, 512  ;;  %p3455_p6 = scmp.lt.s32.totalorder %s94_s20, %s94_s20 }
  0x2e   :  { %p3451_p5 = scmp.ne.s32.totalorder %s94_s20, %s3450_s26  ;;  %p3456_p7 = scmp.lt.s32.totalorder %s3450_s26, %s3450_s26 }
  0x30   :  { %p3457_p8 = por %p3456_p7, %p3455_p6 }
  0x32   :  { %p3458_p9 = pnand %p3457_p8, %p3451_p5 }
  0x34   :  { %3461 = shalt.err (!%p3458_p9)
}
  0x35   :  { %99 = dma.hbm_to_vmem [thread:$0]  %s4048_s8, 512, %s94_s20, [#allocation12], %s3587_s22, %s3587_s22, %s3588_s29  }
  0x36   :  { %s3589_s27 = smov [#allocation2]   ;;  %s3590_s1 = smov [#allocation7]  }
  0x37   :  { %s27_s28 = sshll.u32 %s3589_s27, 4  ;;  %s51_s30 = sshll.u32 %s3590_s1, 4  ;;  %s28_s28 = int_to_ptr.vmem [resolvable:$true] %s27_s28  ;;  %s52_s30 = int_to_ptr.vmem [resolvable:$true] %s51_s30 }
  0x38   :  { %s3462_s17 = scalar_lea.hbm %s4040_s0, 12288 }
  0x39   :  { %p3463_p10 = scmp.ne.s32.totalorder %s4040_s0, %s3462_s17  ;;  %p3466_p11 = scmp.lt.u32.totalorder %s3462_s17, %s4040_s0 }
  0x3b   :  { %p3468_p12 = pnand %p3466_p11, %p3463_p10 }
  0x3d   :  { %3471 = shalt.err (!%p3468_p12)
}
  0x3e   :  { %s3472_s8 = scalar_lea.vmem %s28_s28, 12288  ;;  %p3477_p0 = scmp.lt.s32.totalorder %s28_s28, %s28_s28 }
  0x3f   :  { %p3473_p13 = scmp.ne.s32.totalorder %s28_s28, %s3472_s8  ;;  %p3478_p1 = scmp.lt.s32.totalorder %s3472_s8, %s3472_s8 }
  0x41   :  { %p3479_p2 = por %p3478_p1, %p3477_p0 }
  0x43   :  { %p3480_p3 = pnand %p3479_p2, %p3473_p13 }
  0x45   :  { %3483 = shalt.err (!%p3480_p3)
}
  0x46   :  { %33 = dma.hbm_to_vmem [thread:$0]  %s4040_s0, 12288, %s28_s28, [#allocation3], %s3583_s13, %s3583_s13, %s3584_s14  }
  0x47   :  { %s3484_s18 = scalar_lea.hbm %s4042_s2, 256 }
  0x48   :  { %p3485_p4 = scmp.ne.s32.totalorder %s4042_s2, %s3484_s18  ;;  %p3488_p5 = scmp.lt.u32.totalorder %s3484_s18, %s4042_s2 }
  0x4a   :  { %p3490_p6 = pnand %p3488_p5, %p3485_p4 }
  0x4c   :  { %3493 = shalt.err (!%p3490_p6)
}
  0x4d   :  { %s3494_s17 = scalar_lea.vmem %s52_s30, 256  ;;  %p3499_p8 = scmp.lt.s32.totalorder %s52_s30, %s52_s30 }
  0x4e   :  { %p3495_p7 = scmp.ne.s32.totalorder %s52_s30, %s3494_s17  ;;  %p3500_p9 = scmp.lt.s32.totalorder %s3494_s17, %s3494_s17 }
  0x50   :  { %p3501_p10 = por %p3500_p9, %p3499_p8 }
  0x52   :  { %p3502_p11 = pnand %p3501_p10, %p3495_p7 }
  0x54   :  { %3505 = shalt.err (!%p3502_p11)
}
  0x55   :  { %57 = dma.hbm_to_vmem [thread:$0]  %s4042_s2, 256, %s52_s30, [#allocation6], %s3587_s22, %s3587_s22, %s3588_s29  }
  0x56   :  { %s3591_s14 = smov [#allocation10]   ;;  %s3592_s19 = smov [#allocation13]  }
  0x57   :  { %s81_s28 = sshll.u32 %s3591_s14, 4  ;;  %s107_s21 = sshll.u32 %s3592_s19, 4  ;;  %s82_s28 = int_to_ptr.vmem [resolvable:$true] %s81_s28  ;;  %s108_s21 = int_to_ptr.vmem [resolvable:$true] %s107_s21 }
  0x58   :  { %s3506_s8 = scalar_lea.hbm %s4047_s7, 256 }
  0x59   :  { %p3507_p12 = scmp.ne.s32.totalorder %s4047_s7, %s3506_s8  ;;  %p3510_p13 = scmp.lt.u32.totalorder %s3506_s8, %s4047_s7 }
  0x5b   :  { %p3512_p0 = pnand %p3510_p13, %p3507_p12 }
  0x5d   :  { %3515 = shalt.err (!%p3512_p0)
}
  0x5e   :  { %s3516_s2 = scalar_lea.vmem %s82_s28, 256  ;;  %p3521_p2 = scmp.lt.s32.totalorder %s82_s28, %s82_s28 }
  0x5f   :  { %p3517_p1 = scmp.ne.s32.totalorder %s82_s28, %s3516_s2  ;;  %p3522_p3 = scmp.lt.s32.totalorder %s3516_s2, %s3516_s2 }
  0x61   :  { %p3523_p4 = por %p3522_p3, %p3521_p2 }
  0x63   :  { %p3524_p5 = pnand %p3523_p4, %p3517_p1 }
  0x65   :  { %3527 = shalt.err (!%p3524_p5)
}
  0x66   :  { %87 = dma.hbm_to_vmem [thread:$0]  %s4047_s7, 256, %s82_s28, [#allocation9], %s3587_s22, %s3587_s22, %s3588_s29  }
  0x67   :  { %s3528_s15 = scalar_lea.hbm %s4050_s10, 512 }
  0x68   :  { %p3529_p6 = scmp.ne.s32.totalorder %s4050_s10, %s3528_s15  ;;  %p3532_p7 = scmp.lt.u32.totalorder %s3528_s15, %s4050_s10 }
  0x6a   :  { %p3534_p8 = pnand %p3532_p7, %p3529_p6 }
  0x6c   :  { %3537 = shalt.err (!%p3534_p8)
}
  0x6d   :  { %s3538_s14 = scalar_lea.vmem %s108_s21, 512  ;;  %p3543_p10 = scmp.lt.s32.totalorder %s108_s21, %s108_s21 }
  0x6e   :  { %p3539_p9 = scmp.ne.s32.totalorder %s108_s21, %s3538_s14  ;;  %p3544_p11 = scmp.lt.s32.totalorder %s3538_s14, %s3538_s14 }
  0x70   :  { %p3545_p12 = por %p3544_p11, %p3543_p10 }
  0x72   :  { %p3546_p13 = pnand %p3545_p12, %p3539_p9 }
  0x74   :  { %3549 = shalt.err (!%p3546_p13)
}
  0x75   :  { %113 = dma.hbm_to_vmem [thread:$0]  %s4050_s10, 512, %s108_s21, [#allocation12], %s3587_s22, %s3587_s22, %s3588_s29  }
  0x76   :  { %3572 = dma.done.wait [#allocation3], 12288  }
  0x77   :  { %3573 = vsyncadd [#allocation3], 4294955008 }
  0x78   :  { %3574 = dma.done.wait [#allocation6], 6400  }
  0x79   :  { %3575 = vsyncadd [#allocation6], 4294960896 }
  0x7a   :  { %3576 = dma.done.wait [#allocation9], 512  }
  0x7b   :  { %3577 = vsyncadd [#allocation9], 4294966784 }
  0x7c   :  { %3578 = dma.done.wait [#allocation12], 1024  }
  0x7d   :  { %3579 = vsyncadd [#allocation12], 4294966272  ;;  %v3593_v0 = vmov 0.0   ;;  %v3594_v1 = vmov 0   ;;  %v140_v2 = vld [vmem:[#allocation2 + $0x8] sm:$0xff]  ;;  %v139_v7 = vld [vmem:[#allocation2] sm:$0xff] }
  0x7e   :  { %318 = vmatprep.mubr.f32.mxu1 %v3593_v0  ;;  %626 = vmatprep.mubr.f32.mxu0 %v3593_v0  ;;  %v164_v3 = vld [vmem:[#allocation2 + $0xc8] sm:$0xff]  ;;  %v163_v8 = vld [vmem:[#allocation2 + $0xc0] sm:$0xff]  ;;  %v142_v25 = vld [vmem:[#allocation2 + $0x18] sm:$0xff]  ;;  %vm247_vm0 = vcmask 261120   ;;  %vm3596_vm1 = vmmov 0   ;;  %vm2183_vm2 = vcmask 130048  }
  0x7f   :  { %3363 = vset.pattern.permute.xlu0 %v3594_v1  ;;  %v148_v4 = vld [vmem:[#allocation2 + $0x48] sm:$0xff]  ;;  %v3114_v5 = vpack.c.bf16 %v164_v3, %v140_v2  ;;  %v3116_v10 = vpack.c.bf16 %v163_v8, %v139_v7  ;;  %v147_v11 = vld [vmem:[#allocation2 + $0x40] sm:$0xff]  ;;  %v166_v27 = vld [vmem:[#allocation2 + $0xd8] sm:$0xff]  ;;  %s3597_s2 = smov 64   ;;  %vm2692_vm3 = vcmask 1041408   ;;  %s3599_s15 = smov [#allocation14]  }
  0x80   :  { %v172_v6 = vld [vmem:[#allocation2 + $0x108] sm:$0xff]  ;;  %v171_v12 = vld [vmem:[#allocation2 + $0x100] sm:$0xff]  ;;  %v3122_v30 = vpack.c.bf16 %v166_v27, %v142_v25  ;;  %v141_v32 = vld [vmem:[#allocation2 + $0x10] sm:$0xff]  ;;  %s2948_s16 = sshll.u32 %s3599_s15, 4  ;;  %s2949_s16 = int_to_ptr.vmem [resolvable:$true] %s2948_s16 }
  0x81   :  { %v3146_v9 = vpack.c.bf16 %v172_v6, %v148_v4  ;;  %v188_v13 = vld [vmem:[#allocation2 + $0x188] sm:$0xff]  ;;  %3115 = vmatprep.subr.bf16.mxu1 %v3114_v5  ;;  %v3148_v14 = vpack.c.bf16 %v171_v12, %v147_v11  ;;  %v187_v20 = vld [vmem:[#allocation2 + $0x180] sm:$0xff]  ;;  %v165_v33 = vld [vmem:[#allocation2 + $0xd0] sm:$0xff]  ;;  %s3550_s17 = scalar_lea.vmem %s2949_s16, 64  ;;  %p3555_p1 = scmp.lt.s32.totalorder %s2949_s16, %s2949_s16 }
  0x82   :  { %v212_v15 = vld [vmem:[#allocation2 + $0x248] sm:$0xff]  ;;  %3117 = vmatpush1.bf16.msra.mxu1 %v3116_v10  ;;  %v211_v21 = vld [vmem:[#allocation2 + $0x240] sm:$0xff]  ;;  %v3124_v36 = vpack.c.bf16 %v165_v33, %v141_v32  ;;  %v190_v38 = vld [vmem:[#allocation2 + $0x198] sm:$0xff]  ;;  %p3551_p0 = scmp.ne.s32.totalorder %s2949_s16, %s3550_s17  ;;  %p3556_p2 = scmp.lt.s32.totalorder %s3550_s17, %s3550_s17 }
  0x83   :  { %v196_v16 = vld [vmem:[#allocation2 + $0x1c8] sm:$0xff]  ;;  %3147 = vmatprep.subr.bf16.mxu0 %v3146_v9  ;;  %v3118_v18 = vpack.c.bf16 %v212_v15, %v188_v13  ;;  %v195_v22 = vld [vmem:[#allocation2 + $0x1c0] sm:$0xff]  ;;  %v3120_v23 = vpack.c.bf16 %v211_v21, %v187_v20  ;;  %v214_v40 = vld [vmem:[#allocation2 + $0x258] sm:$0xff] }
  0x84   :  { %v220_v17 = vld [vmem:[#allocation2 + $0x288] sm:$0xff]  ;;  %3149 = vmatpush1.bf16.msra.mxu0 %v3148_v14  ;;  %v219_v24 = vld [vmem:[#allocation2 + $0x280] sm:$0xff]  ;;  %v3126_v43 = vpack.c.bf16 %v214_v40, %v190_v38  ;;  %v189_v44 = vld [vmem:[#allocation2 + $0x190] sm:$0xff]  ;;  %p3557_p3 = por %p3556_p2, %p3555_p1 }
  0x85   :  { %v3150_v19 = vpack.c.bf16 %v220_v17, %v196_v16  ;;  %3119 = vmatprep.subr.bf16.mxu1 %v3118_v18  ;;  %v3152_v26 = vpack.c.bf16 %v219_v24, %v195_v22  ;;  %v152_v28 = vld [vmem:[#allocation2 + $0x68] sm:$0xff]  ;;  %v151_v34 = vld [vmem:[#allocation2 + $0x60] sm:$0xff]  ;;  %v213_v45 = vld [vmem:[#allocation2 + $0x250] sm:$0xff] }
  0x86   :  { %v176_v29 = vld [vmem:[#allocation2 + $0x128] sm:$0xff]  ;;  %3121 = vmatpush1.bf16.msra.mxu1 %v3120_v23  ;;  %v3772_v35 = vld [vmem:[#allocation7] sm:$0xff]  ;;  %v3128_v52 = vpack.c.bf16 %v213_v45, %v189_v44  ;;  %v146_v11 = vld [vmem:[#allocation2 + $0x38] sm:$0xff]  ;;  %p3558_p4 = pnand %p3557_p3, %p3551_p0 }
  0x87   :  { %3151 = vmatprep.subr.bf16.mxu0 %v3150_v19  ;;  %v3162_v31 = vpack.c.bf16 %v176_v29, %v152_v28  ;;  %v175_v37 = vld [vmem:[#allocation2 + $0x120] sm:$0xff]  ;;  %3123 = vmatprep.subr.bf16.mxu1 %v3122_v30  ;;  %v200_v41 = vld [vmem:[#allocation2 + $0x1e8] sm:$0xff]  ;;  %v170_v12 = vld [vmem:[#allocation2 + $0xf8] sm:$0xff] }
  0x88   :  { %3153 = vmatpush1.bf16.msra.mxu0 %v3152_v26  ;;  %v3164_v39 = vpack.c.bf16 %v175_v37, %v151_v34  ;;  %v224_v42 = vld [vmem:[#allocation2 + $0x2a8] sm:$0xff]  ;;  %v199_v46 = vld [vmem:[#allocation2 + $0x1e0] sm:$0xff]  ;;  %v145_v17 = vld [vmem:[#allocation2 + $0x30] sm:$0xff]  ;;  %v3138_v19 = vpack.c.bf16 %v170_v12, %v146_v11 }
  0x89   :  { %3163 = vmatprep.subr.bf16.mxu0 %v3162_v31  ;;  %2960 = vmatmul.mubr.msk.f32.vlgmr.msra.gmra.mrb[0].mxu1 %vm247_vm0, %v3772_v35  ;;  %v3166_v47 = vpack.c.bf16 %v224_v42, %v200_v41  ;;  %v223_v48 = vld [vmem:[#allocation2 + $0x2a0] sm:$0xff]  ;;  %v144_v49 = vld [vmem:[#allocation2 + $0x28] sm:$0xff]  ;;  %v169_v18 = vld [vmem:[#allocation2 + $0xf0] sm:$0xff] }
  0x8a   :  { %v168_v50 = vld [vmem:[#allocation2 + $0xe8] sm:$0xff]  ;;  %3125 = vmatpush1.bf16.msra.mxu1 %v3124_v36  ;;  %324 = vmatprep.mubr.f32.mxu1 %v3593_v0  ;;  %v3168_v55 = vpack.c.bf16 %v223_v48, %v199_v46  ;;  %v143_v56 = vld [vmem:[#allocation2 + $0x20] sm:$0xff]  ;;  %v194_v23 = vld [vmem:[#allocation2 + $0x1b8] sm:$0xff]  ;;  %v3140_v25 = vpack.c.bf16 %v169_v18, %v145_v17 }
  0x8b   :  { %2968 = vmatmul.mubr.msk.f32.vlgmr.msra.gmra.mrb[0].mxu0 %vm247_vm0, %v3772_v35  ;;  %v3778_v51 = vld [vmem:[#allocation7 + $0x8] sm:$0xff]  ;;  %v167_v57 = vld [vmem:[#allocation2 + $0xe0] sm:$0xff]  ;;  %3127 = vmatprep.subr.bf16.mxu1 %v3126_v43  ;;  %v3130_v58 = vpack.c.bf16 %v168_v50, %v144_v49  ;;  %v218_v24 = vld [vmem:[#allocation2 + $0x278] sm:$0xff] }
  0x8c   :  { %v156_v53 = vld [vmem:[#allocation2 + $0x88] sm:$0xff]  ;;  %3165 = vmatpush1.bf16.msra.mxu0 %v3164_v39  ;;  %632 = vmatprep.mubr.f32.mxu0 %v3593_v0  ;;  %v155_v59 = vld [vmem:[#allocation2 + $0x80] sm:$0xff]  ;;  %v3132_v1 = vpack.c.bf16 %v167_v57, %v143_v56  ;;  %v193_v29 = vld [vmem:[#allocation2 + $0x1b0] sm:$0xff]  ;;  %v3142_v31 = vpack.c.bf16 %v218_v24, %v194_v23 }
  0x8d   :  { %v180_v54 = vld [vmem:[#allocation2 + $0x148] sm:$0xff]  ;;  %v179_v60 = vld [vmem:[#allocation2 + $0x140] sm:$0xff]  ;;  %2961 = vmatmul.mubr.msk.f32.gmra.mrb[2].mxu1 %vm247_vm0, %v3778_v51  ;;  %3167 = vmatprep.subr.bf16.mxu0 %v3166_v47  ;;  %v217_v30 = vld [vmem:[#allocation2 + $0x270] sm:$0xff] }
  0x8e   :  { %v3178_v61 = vpack.c.bf16 %v180_v54, %v156_v53  ;;  %v192_v62 = vld [vmem:[#allocation2 + $0x1a8] sm:$0xff]  ;;  %3129 = vmatpush1.bf16.msra.mxu1 %v3128_v52  ;;  %395 = vmatprep.mubr.f32.mxu1 %v3593_v0  ;;  %v3180_v4 = vpack.c.bf16 %v179_v60, %v155_v59  ;;  %v191_v5 = vld [vmem:[#allocation2 + $0x1a0] sm:$0xff]  ;;  %v150_v36 = vld [vmem:[#allocation2 + $0x58] sm:$0xff]  ;;  %v3144_v38 = vpack.c.bf16 %v217_v30, %v193_v29 }
  0x8f   :  { %v216_v63 = vld [vmem:[#allocation2 + $0x268] sm:$0xff]  ;;  %2969 = vmatmul.mubr.msk.f32.gmra.mrb[2].mxu0 %vm247_vm0, %v3778_v51  ;;  %v215_v6 = vld [vmem:[#allocation2 + $0x260] sm:$0xff]  ;;  %3131 = vmatprep.subr.bf16.mxu1 %v3130_v58  ;;  %v174_v37 = vld [vmem:[#allocation2 + $0x118] sm:$0xff] }
  0x90   :  { %v204_v2 = vld [vmem:[#allocation2 + $0x208] sm:$0xff]  ;;  %3169 = vmatpush1.bf16.msra.mxu0 %v3168_v55  ;;  %780 = vmatprep.mubr.f32.mxu0 %v3593_v0  ;;  %v3134_v7 = vpack.c.bf16 %v216_v63, %v192_v62  ;;  %v203_v8 = vld [vmem:[#allocation2 + $0x200] sm:$0xff]  ;;  %v3136_v13 = vpack.c.bf16 %v215_v6, %v191_v5  ;;  %v149_v40 = vld [vmem:[#allocation2 + $0x50] sm:$0xff]  ;;  %v3154_v42 = vpack.c.bf16 %v174_v37, %v150_v36 }
  0x91   :  { %v228_v3 = vld [vmem:[#allocation2 + $0x2c8] sm:$0xff]  ;;  %v227_v9 = vld [vmem:[#allocation2 + $0x2c0] sm:$0xff]  ;;  %2962 = vmatmul.mubr.msk.f32.vlgmr.msra.gmra.mrb[4].mxu1 %vm247_vm0, %v3772_v35  ;;  %3179 = vmatprep.subr.bf16.mxu0 %v3178_v61  ;;  %v173_v41 = vld [vmem:[#allocation2 + $0x110] sm:$0xff] }
  0x92   :  { %v3182_v10 = vpack.c.bf16 %v228_v3, %v204_v2  ;;  %3133 = vmatpush1.bf16.msra.mxu1 %v3132_v1  ;;  %v160_v14 = vld [vmem:[#allocation2 + $0xa8] sm:$0xff]  ;;  %401 = vmatprep.mubr.f32.mxu1 %v3593_v0  ;;  %v3184_v16 = vpack.c.bf16 %v227_v9, %v203_v8  ;;  %v159_v20 = vld [vmem:[#allocation2 + $0xa0] sm:$0xff]  ;;  %v198_v43 = vld [vmem:[#allocation2 + $0x1d8] sm:$0xff]  ;;  %v3156_v45 = vpack.c.bf16 %v173_v41, %v149_v40 }
  0x93   :  { %2972 = vmatmul.mubr.msk.f32.vlgmr.msra.gmra.mrb[4].mxu0 %vm247_vm0, %v3772_v35  ;;  %v184_v15 = vld [vmem:[#allocation2 + $0x168] sm:$0xff]  ;;  %3135 = vmatprep.subr.bf16.mxu1 %v3134_v7  ;;  %v183_v21 = vld [vmem:[#allocation2 + $0x160] sm:$0xff]  ;;  %v222_v44 = vld [vmem:[#allocation2 + $0x298] sm:$0xff] }
  0x94   :  { %3181 = vmatpush1.bf16.msra.mxu0 %v3180_v4  ;;  %786 = vmatprep.mubr.f32.mxu0 %v3593_v0  ;;  %v3194_v22 = vpack.c.bf16 %v184_v15, %v160_v14  ;;  %v208_v26 = vld [vmem:[#allocation2 + $0x228] sm:$0xff]  ;;  %v3196_v28 = vpack.c.bf16 %v183_v21, %v159_v20  ;;  %v207_v32 = vld [vmem:[#allocation2 + $0x220] sm:$0xff]  ;;  %v197_v47 = vld [vmem:[#allocation2 + $0x1d0] sm:$0xff]  ;;  %v3158_v49 = vpack.c.bf16 %v222_v44, %v198_v43 }
  0x95   :  { %2963 = vmatmul.mubr.msk.f32.gmra.mrb[6].mxu1 %vm247_vm0, %v3778_v51  ;;  %3183 = vmatprep.subr.bf16.mxu0 %v3182_v10  ;;  %v232_v27 = vld [vmem:[#allocation2 + $0x2e8] sm:$0xff]  ;;  %v231_v33 = vld [vmem:[#allocation2 + $0x2e0] sm:$0xff]  ;;  %v221_v48 = vld [vmem:[#allocation2 + $0x290] sm:$0xff] }
  0x96   :  { %3137 = vmatpush1.bf16.msra.mxu1 %v3136_v13  ;;  %472 = vmatprep.mubr.f32.mxu1 %v3593_v0  ;;  %v3198_v34 = vpack.c.bf16 %v232_v27, %v208_v26  ;;  %v3200_v39 = vpack.c.bf16 %v231_v33, %v207_v32  ;;  %v235_v46 = vld [vmem:[%s4043_s3] sm:$0xff]  ;;  %v154_v50 = vld [vmem:[#allocation2 + $0x78] sm:$0xff]  ;;  %v3160_v53 = vpack.c.bf16 %v221_v48, %v197_v47  ;;  %v236_v54 = vld [vmem:[%s4043_s3 + $0x8] sm:$0xff] }
  0x97   :  { %2973 = vmatmul.mubr.msk.f32.gmra.mrb[6].mxu0 %vm247_vm0, %v3778_v51  ;;  %3139 = vmatprep.subr.bf16.mxu1 %v3138_v19  ;;  %v178_v52 = vld [vmem:[#allocation2 + $0x138] sm:$0xff]  ;;  %v153_v56 = vld [vmem:[#allocation2 + $0x70] sm:$0xff]  ;;  %v1227_v26 = vld [vmem:[#allocation5 + $0x8] sm:$0xff] }
  0x98   :  { %3185 = vmatpush1.bf16.msra.mxu0 %v3184_v16  ;;  %934 = vmatprep.mubr.f32.mxu0 %v3593_v0  ;;  %v3170_v55 = vpack.c.bf16 %v178_v52, %v154_v50  ;;  %v177_v57 = vld [vmem:[#allocation2 + $0x130] sm:$0xff]  ;;  %v202_v58 = vld [vmem:[#allocation2 + $0x1f8] sm:$0xff] }
  0x99   :  { %2964 = vmatmul.mubr.msk.f32.vlgmr.msra.gmra.mrb[8].mxu1 %vm247_vm0, %v3772_v35  ;;  %3195 = vmatprep.subr.bf16.mxu0 %v3194_v22  ;;  %v226_v59 = vld [vmem:[#allocation2 + $0x2b8] sm:$0xff]  ;;  %v3172_v60 = vpack.c.bf16 %v177_v57, %v153_v56  ;;  %v201_v62 = vld [vmem:[#allocation2 + $0x1f0] sm:$0xff] }
  0x9a   :  { %3141 = vmatpush1.bf16.msra.mxu1 %v3140_v25  ;;  %478 = vmatprep.mubr.f32.mxu1 %v3593_v0  ;;  %v3174_v61 = vpack.c.bf16 %v226_v59, %v202_v58  ;;  %v225_v63 = vld [vmem:[#allocation2 + $0x2b0] sm:$0xff]  ;;  %v158_v1 = vld [vmem:[#allocation2 + $0x98] sm:$0xff] }
  0x9b   :  { %2976 = vmatmul.mubr.msk.f32.vlgmr.msra.gmra.mrb[8].mxu0 %vm247_vm0, %v3772_v35  ;;  %3143 = vmatprep.subr.bf16.mxu1 %v3142_v31  ;;  %v182_v2 = vld [vmem:[#allocation2 + $0x158] sm:$0xff]  ;;  %v3176_v3 = vpack.c.bf16 %v225_v63, %v201_v62  ;;  %v157_v5 = vld [vmem:[#allocation2 + $0x90] sm:$0xff] }
  0x9c   :  { %3197 = vmatpush1.bf16.msra.mxu0 %v3196_v28  ;;  %940 = vmatprep.mubr.f32.mxu0 %v3593_v0  ;;  %v3186_v4 = vpack.c.bf16 %v182_v2, %v158_v1  ;;  %v181_v6 = vld [vmem:[#allocation2 + $0x150] sm:$0xff]  ;;  %v206_v7 = vld [vmem:[#allocation2 + $0x218] sm:$0xff] }
  0x9d   :  { %2965 = vmatmul.mubr.msk.f32.gmra.mrb[10].mxu1 %vm247_vm0, %v3778_v51  ;;  %3199 = vmatprep.subr.bf16.mxu0 %v3198_v34  ;;  %v230_v8 = vld [vmem:[#allocation2 + $0x2d8] sm:$0xff]  ;;  %v3188_v9 = vpack.c.bf16 %v181_v6, %v157_v5  ;;  %v205_v11 = vld [vmem:[#allocation2 + $0x210] sm:$0xff] }
  0x9e   :  { %3145 = vmatpush1.bf16.msra.mxu1 %v3144_v38  ;;  %549 = vmatprep.mubr.f32.mxu1 %v3593_v0  ;;  %v3190_v10 = vpack.c.bf16 %v230_v8, %v206_v7  ;;  %v229_v12 = vld [vmem:[#allocation2 + $0x2d0] sm:$0xff]  ;;  %v162_v13 = vld [vmem:[#allocation2 + $0xb8] sm:$0xff] }
  0x9f   :  { %2977 = vmatmul.mubr.msk.f32.gmra.mrb[10].mxu0 %vm247_vm0, %v3778_v51  ;;  %3155 = vmatprep.subr.bf16.mxu1 %v3154_v42  ;;  %v186_v14 = vld [vmem:[#allocation2 + $0x178] sm:$0xff]  ;;  %v3192_v15 = vpack.c.bf16 %v229_v12, %v205_v11  ;;  %v161_v17 = vld [vmem:[#allocation2 + $0xb0] sm:$0xff] }
  0xa0   :  { %3201 = vmatpush1.bf16.msra.mxu0 %v3200_v39  ;;  %1088 = vmatprep.mubr.f32.mxu0 %v3593_v0  ;;  %v3202_v16 = vpack.c.bf16 %v186_v14, %v162_v13  ;;  %v185_v18 = vld [vmem:[#allocation2 + $0x170] sm:$0xff]  ;;  %v210_v19 = vld [vmem:[#allocation2 + $0x238] sm:$0xff] }
  0xa1   :  { %2966 = vmatmul.mubr.msk.f32.vlgmr.msra.gmra.mrb[12].mxu1 %vm247_vm0, %v3772_v35  ;;  %239 = vperm.xlu0 %3363, %v235_v46   ;;  %v234_v20 = vld [vmem:[#allocation2 + $0x2f8] sm:$0xff]  ;;  %v3204_v21 = vpack.c.bf16 %v185_v18, %v161_v17  ;;  %v209_v23 = vld [vmem:[#allocation2 + $0x230] sm:$0xff] }
  0xa2   :  { %3157 = vmatpush1.bf16.msra.mxu1 %v3156_v45  ;;  %555 = vmatprep.mubr.f32.mxu1 %v3593_v0  ;;  %v3206_v22 = vpack.c.bf16 %v234_v20, %v210_v19  ;;  %v233_v24 = vld [vmem:[#allocation2 + $0x2f0] sm:$0xff]  ;;  %v1273_v27 = vld [vmem:[#allocation5 + $0x178] sm:$0xf] }
  0xa3   :  { %2980 = vmatmul.mubr.msk.f32.vlgmr.msra.gmra.mrb[12].mxu0 %vm247_vm0, %v3772_v35  ;;  %3159 = vmatprep.subr.bf16.mxu1 %v3158_v49  ;;  %v3208_v25 = vpack.c.bf16 %v233_v24, %v209_v23  ;;  %v1226_v23 = vld [vmem:[#allocation5] sm:$0xff] }
  0xa4   :  { %1094 = vmatprep.mubr.f32.mxu0 %v3593_v0 }
  0xa5   :  { %2967 = vmatmul.mubr.msk.f32.gmra.mrb[14].mxu1 %vm247_vm0, %v3778_v51  ;;  %244 = vperm.xlu0 %3363, %v236_v54  }
  0xa6   :  { %3161 = vmatpush1.bf16.msra.mxu1 %v3160_v53  ;;  %703 = vmatprep.mubr.f32.mxu1 %v3593_v0 }
  0xa7   :  { %2981 = vmatmul.mubr.msk.f32.gmra.mrb[14].mxu0 %vm247_vm0, %v3778_v51  ;;  %3171 = vmatprep.subr.bf16.mxu1 %v3170_v55 }
  0xa8   :  { %1338 = vmatprep.mubr.f32.mxu0 %v1227_v26 }
  0xa9   :  { %2970 = vmatmul.mubr.msk.f32.vlgmr.msra.gmra.mrb[16].mxu1 %vm247_vm0, %v3772_v35 }
  0xaa   :  { %3173 = vmatpush1.bf16.msra.mxu1 %v3172_v60  ;;  %709 = vmatprep.mubr.f32.mxu1 %v3593_v0 }
  0xab   :  { %3175 = vmatprep.subr.bf16.mxu1 %v3174_v61 }
  0xad   :  { %2971 = vmatmul.mubr.msk.f32.gmra.mrb[18].mxu1 %vm247_vm0, %v3778_v51 }
  0xae   :  { %3177 = vmatpush1.bf16.msra.mxu1 %v3176_v3  ;;  %857 = vmatprep.mubr.f32.mxu1 %v3593_v0 }
  0xaf   :  { %3187 = vmatprep.subr.bf16.mxu1 %v3186_v4 }
  0xb1   :  { %2974 = vmatmul.mubr.msk.f32.vlgmr.msra.gmra.mrb[20].mxu1 %vm247_vm0, %v3772_v35 }
  0xb2   :  { %3189 = vmatpush1.bf16.msra.mxu1 %v3188_v9  ;;  %863 = vmatprep.mubr.f32.mxu1 %v3593_v0 }
  0xb3   :  { %3191 = vmatprep.subr.bf16.mxu1 %v3190_v10 }
  0xb5   :  { %2975 = vmatmul.mubr.msk.f32.gmra.mrb[22].mxu1 %vm247_vm0, %v3778_v51 }
  0xb6   :  { %3193 = vmatpush1.bf16.msra.mxu1 %v3192_v15  ;;  %1011 = vmatprep.mubr.f32.mxu1 %v3593_v0 }
  0xb7   :  { %3203 = vmatprep.subr.bf16.mxu1 %v3202_v16 }
  0xb9   :  { %2978 = vmatmul.mubr.msk.f32.vlgmr.msra.gmra.mrb[24].mxu1 %vm247_vm0, %v3772_v35 }
  0xba   :  { %3205 = vmatpush1.bf16.msra.mxu1 %v3204_v21  ;;  %1017 = vmatprep.mubr.f32.mxu1 %v3593_v0 }
  0xbb   :  { %3207 = vmatprep.subr.bf16.mxu1 %v3206_v22 }
  0xbd   :  { %2979 = vmatmul.mubr.msk.f32.gmra.mrb[26].mxu1 %vm247_vm0, %v3778_v51 }
  0xbe   :  { %3209 = vmatpush1.bf16.msra.mxu1 %v3208_v25  ;;  %1165 = vmatprep.mubr.f32.mxu1 %v3593_v0 }
  0xc1   :  { %2982 = vmatmul.mubr.msk.f32.vlgmr.msra.gmra.mrb[28].mxu1 %vm247_vm0, %v3772_v35 }
  0xc2   :  { %1171 = vmatprep.mubr.f32.mxu1 %v3593_v0 }
  0xc5   :  { %2983 = vmatmul.mubr.msk.f32.gmra.mrb[30].mxu1 %vm247_vm0, %v3778_v51 }
  0xc6   :  { %2168 = vmatprep.mubr.f32.mxu1 %v1273_v27  ;;  %v1251_v27 = vld [vmem:[#allocation5 + $0xc8] sm:$0xf] }
 0x120   :  { %v3852_v28 = vpop.permute.xlu0 %239 }
 0x124   :  { %v3856_v35 = vpop.permute.xlu0 %244 }
 0x15c   :  { %v320_v29 = vpop.f32.mrb[0].mxu1 }
 0x15d   :  { %v322_v31 = vpop.f32.mrb[1].mxu1  ;;  %v321_v33 = vadd.f32 %v320_v29, %v3852_v28 }
 0x15e   :  { %v628_v30 = vpop.f32.mrb[0].mxu0  ;;  %v323_v36 = vadd.f32 %v322_v31, %v3852_v28 }
 0x15f   :  { %v630_v32 = vpop.f32.mrb[1].mxu0  ;;  %v629_v34 = vadd.f32 %v628_v30, %v3852_v28  ;;  %v1178_v44 = vmax.f32 %v321_v33, 0.0 }
 0x160   :  { %v326_v37 = vpop.f32.mrb[2].mxu1  ;;  %v631_v51 = vadd.f32 %v630_v32, %v3852_v28  ;;  %v1179_v48 = vmax.f32 %v323_v36, 0.0 }
 0x161   :  { %v327_v38 = vadd.f32 %v326_v37, %v3856_v35  ;;  %v328_v40 = vpop.f32.mrb[3].mxu1  ;;  %v1186_v47 = vmax.f32 %v629_v34, 0.0 }
 0x162   :  { %v634_v39 = vpop.f32.mrb[2].mxu0  ;;  %v329_v42 = vadd.f32 %v328_v40, %v3856_v35  ;;  %v1187_v53 = vmax.f32 %v631_v51, 0.0 }
 0x163   :  { %v635_v41 = vadd.f32 %v634_v39, %v3856_v35  ;;  %v636_v43 = vpop.f32.mrb[3].mxu0  ;;  %v1202_v45 = vmax.f32 %v327_v38, 0.0  ;;  %v1250_v38 = vld [vmem:[#allocation5 + $0xc0] sm:$0xf] }
 0x164   :  { %v637_v46 = vadd.f32 %v636_v43, %v3856_v35  ;;  %v1203_v50 = vmax.f32 %v329_v42, 0.0  ;;  %v397_v52 = vpop.f32.mrb[4].mxu1  ;;  %v1229_v42 = vld [vmem:[#allocation5 + $0x18] sm:$0xff] }
 0x165   :  { %v1210_v49 = vmax.f32 %v635_v41, 0.0  ;;  %v3212_v54 = vpack.c.bf16 %v1202_v45, %v1178_v44  ;;  %v399_v57 = vpop.f32.mrb[5].mxu1  ;;  %v398_v62 = vadd.f32 %v397_v52, %v3852_v28 }
 0x166   :  { %v1211_v55 = vmax.f32 %v637_v46, 0.0  ;;  %v782_v56 = vpop.f32.mrb[4].mxu0  ;;  %v3210_v59 = vpack.c.bf16 %v1203_v50, %v1179_v48  ;;  %v400_v1 = vadd.f32 %v399_v57, %v3852_v28  ;;  %v1228_v57 = vld [vmem:[#allocation5 + $0x10] sm:$0xff] }
 0x167   :  { %v3864_v58 = vpack.c.bf16 %v1210_v49, %v1186_v47  ;;  %v784_v60 = vpop.f32.mrb[5].mxu0  ;;  %v783_v63 = vadd.f32 %v782_v56, %v3852_v28  ;;  %v1180_v10 = vmax.f32 %v398_v62, 0.0 }
 0x168   :  { %v3866_v61 = vpack.c.bf16 %v1211_v55, %v1187_v53  ;;  %v403_v2 = vpop.f32.mrb[6].mxu1  ;;  %3211 = vmatprep.subr.bf16.mxu0 %v3210_v59  ;;  %v785_v3 = vadd.f32 %v784_v60, %v3852_v28  ;;  %v1181_v14 = vmax.f32 %v400_v1, 0.0 }
 0x169   :  { %v404_v4 = vadd.f32 %v403_v2, %v3856_v35  ;;  %v405_v6 = vpop.f32.mrb[7].mxu1  ;;  %3213 = vmatpush1.bf16.xpose.msra.mxu0 %v3212_v54  ;;  %v1190_v13 = vmax.f32 %v783_v63, 0.0  ;;  %v1253_v63 = vld [vmem:[#allocation5 + $0xd8] sm:$0xf] }
 0x16a   :  { %v788_v5 = vpop.f32.mrb[6].mxu0  ;;  %v406_v8 = vadd.f32 %v405_v6, %v3856_v35  ;;  %v1191_v18 = vmax.f32 %v785_v3, 0.0 }
 0x16b   :  { %v789_v7 = vadd.f32 %v788_v5, %v3856_v35  ;;  %v790_v9 = vpop.f32.mrb[7].mxu0  ;;  %v1204_v11 = vmax.f32 %v404_v4, 0.0 }
 0x16c   :  { %v791_v12 = vadd.f32 %v790_v9, %v3856_v35  ;;  %v1205_v16 = vmax.f32 %v406_v8, 0.0  ;;  %v474_v17 = vpop.f32.mrb[8].mxu1 }
 0x16d   :  { %v1214_v15 = vmax.f32 %v789_v7, 0.0  ;;  %v3216_v19 = vpack.c.bf16 %v1204_v11, %v1180_v10  ;;  %v476_v22 = vpop.f32.mrb[9].mxu1  ;;  %v475_v30 = vadd.f32 %v474_v17, %v3852_v28  ;;  %v1252_v10 = vld [vmem:[#allocation5 + $0xd0] sm:$0xf] }
 0x16e   :  { %v1215_v20 = vmax.f32 %v791_v12, 0.0  ;;  %v936_v21 = vpop.f32.mrb[8].mxu0  ;;  %v3214_v25 = vpack.c.bf16 %v1205_v16, %v1181_v14  ;;  %v477_v32 = vadd.f32 %v476_v22, %v3852_v28  ;;  %v1231_v14 = vld [vmem:[#allocation5 + $0x28] sm:$0xff] }
 0x16f   :  { %v3876_v24 = vpack.c.bf16 %v1214_v15, %v1190_v13  ;;  %v938_v26 = vpop.f32.mrb[9].mxu0  ;;  %v937_v31 = vadd.f32 %v936_v21, %v3852_v28  ;;  %v1182_v43 = vmax.f32 %v475_v30, 0.0  ;;  %v1230_v30 = vld [vmem:[#allocation5 + $0x20] sm:$0xff] }
 0x170   :  { %v3878_v29 = vpack.c.bf16 %v1215_v20, %v1191_v18  ;;  %v480_v33 = vpop.f32.mrb[10].mxu1  ;;  %1339 = vmatmul.mubr.f32.vlgmr.msra.gmra.mrb[16].mxu0 %v1226_v23  ;;  %3215 = vmatprep.subr.bf16.mxu0 %v3214_v25  ;;  %v939_v34 = vadd.f32 %v938_v26, %v3852_v28  ;;  %v1183_v47 = vmax.f32 %v477_v32, 0.0 }
 0x171   :  { %v481_v36 = vadd.f32 %v480_v33, %v3856_v35  ;;  %v482_v51 = vpop.f32.mrb[11].mxu1  ;;  %3217 = vmatpush1.bf16.xpose.msra.mxu0 %v3216_v19  ;;  %1343 = vmatprep.mubr.f32.mxu0 %v1251_v27  ;;  %v1194_v46 = vmax.f32 %v937_v31, 0.0  ;;  %v1255_v33 = vld [vmem:[#allocation5 + $0xe8] sm:$0xf] }
 0x172   :  { %v942_v37 = vpop.f32.mrb[10].mxu0  ;;  %v483_v40 = vadd.f32 %v482_v51, %v3856_v35  ;;  %v1195_v52 = vmax.f32 %v939_v34, 0.0 }
 0x173   :  { %v943_v39 = vadd.f32 %v942_v37, %v3856_v35  ;;  %v944_v41 = vpop.f32.mrb[11].mxu0  ;;  %v1206_v44 = vmax.f32 %v481_v36, 0.0 }
 0x174   :  { %v945_v45 = vadd.f32 %v944_v41, %v3856_v35  ;;  %v1207_v49 = vmax.f32 %v483_v40, 0.0  ;;  %v551_v50 = vpop.f32.mrb[12].mxu1  ;;  %1344 = vmatmul.mubr.f32.gmra.mrb[18].mxu0 %v1250_v38  ;;  %v1254_v40 = vld [vmem:[#allocation5 + $0xe0] sm:$0xf] }
 0x175   :  { %v1218_v48 = vmax.f32 %v943_v39, 0.0  ;;  %v3220_v53 = vpack.c.bf16 %v1206_v44, %v1182_v43  ;;  %v553_v56 = vpop.f32.mrb[13].mxu1  ;;  %1413 = vmatprep.mubr.f32.mxu0 %v1229_v42  ;;  %v552_v2 = vadd.f32 %v551_v50, %v3852_v28  ;;  %v1233_v42 = vld [vmem:[#allocation5 + $0x38] sm:$0xff]  ;;  %v1232_v50 = vld [vmem:[#allocation5 + $0x30] sm:$0xff] }
 0x176   :  { %v1219_v54 = vmax.f32 %v945_v45, 0.0  ;;  %v1090_v55 = vpop.f32.mrb[12].mxu0  ;;  %v3218_v60 = vpack.c.bf16 %v1207_v49, %v1183_v47  ;;  %v554_v4 = vadd.f32 %v553_v56, %v3852_v28 }
 0x177   :  { %v3888_v59 = vpack.c.bf16 %v1218_v48, %v1194_v46  ;;  %v1092_v62 = vpop.f32.mrb[13].mxu0  ;;  %v1091_v3 = vadd.f32 %v1090_v55, %v3852_v28  ;;  %v1184_v15 = vmax.f32 %v552_v2, 0.0 }
 0x178   :  { %v3890_v1 = vpack.c.bf16 %v1219_v54, %v1195_v52  ;;  %v557_v5 = vpop.f32.mrb[14].mxu1  ;;  %1414 = vmatmul.mubr.f32.vlgmr.msra.gmra.mrb[16].mxu0 %v1228_v57  ;;  %3219 = vmatprep.subr.bf16.mxu0 %v3218_v60  ;;  %v1093_v6 = vadd.f32 %v1092_v62, %v3852_v28  ;;  %v1185_v19 = vmax.f32 %v554_v4, 0.0  ;;  %v1256_v60 = vld [vmem:[#allocation5 + $0xf0] sm:$0xf] }
 0x179   :  { %v558_v7 = vadd.f32 %v557_v5, %v3856_v35  ;;  %v559_v9 = vpop.f32.mrb[15].mxu1  ;;  %3221 = vmatpush1.bf16.xpose.msra.mxu0 %v3220_v53  ;;  %1418 = vmatprep.mubr.f32.mxu0 %v1253_v63  ;;  %v1198_v18 = vmax.f32 %v1091_v3, 0.0  ;;  %v1257_v53 = vld [vmem:[#allocation5 + $0xf8] sm:$0xf]  ;;  %v1235_v63 = vld [vmem:[#allocation5 + $0x48] sm:$0xff] }
 0x17a   :  { %v1096_v8 = vpop.f32.mrb[14].mxu0  ;;  %v560_v12 = vadd.f32 %v559_v9, %v3856_v35  ;;  %v1199_v23 = vmax.f32 %v1093_v6, 0.0  ;;  %v1234_v9 = vld [vmem:[#allocation5 + $0x40] sm:$0xff] }
 0x17b   :  { %v1097_v11 = vadd.f32 %v1096_v8, %v3856_v35  ;;  %v1098_v13 = vpop.f32.mrb[15].mxu0  ;;  %v1208_v16 = vmax.f32 %v558_v7, 0.0 }
 0x17c   :  { %v1099_v17 = vadd.f32 %v1098_v13, %v3856_v35  ;;  %v1209_v21 = vmax.f32 %v560_v12, 0.0  ;;  %v705_v22 = vpop.f32.mrb[16].mxu1  ;;  %1419 = vmatmul.mubr.f32.gmra.mrb[18].mxu0 %v1252_v10 }
 0x17d   :  { %v1222_v20 = vmax.f32 %v1097_v11, 0.0  ;;  %v3224_v25 = vpack.c.bf16 %v1208_v16, %v1184_v15  ;;  %v707_v27 = vpop.f32.mrb[17].mxu1  ;;  %1488 = vmatprep.mubr.f32.mxu0 %v1231_v14  ;;  %v706_v36 = vadd.f32 %v705_v22, %v3852_v28  ;;  %v1259_v11 = vld [vmem:[#allocation5 + $0x108] sm:$0xf]  ;;  %v1258_v16 = vld [vmem:[#allocation5 + $0x100] sm:$0xf] }
 0x17e   :  { %v1223_v26 = vmax.f32 %v1099_v17, 0.0  ;;  %v3222_v32 = vpack.c.bf16 %v1209_v21, %v1185_v19  ;;  %v708_v37 = vadd.f32 %v707_v27, %v3852_v28  ;;  %v1236_v27 = vld [vmem:[#allocation5 + $0x50] sm:$0xff] }
 0x17f   :  { %v3900_v31 = vpack.c.bf16 %v1222_v20, %v1198_v18  ;;  %v1188_v43 = vmax.f32 %v706_v36, 0.0  ;;  %v1237_v18 = vld [vmem:[#allocation5 + $0x58] sm:$0xff] }
 0x180   :  { %v3902_v34 = vpack.c.bf16 %v1223_v26, %v1199_v23  ;;  %v711_v51 = vpop.f32.mrb[18].mxu1  ;;  %1489 = vmatmul.mubr.f32.vlgmr.msra.gmra.mrb[16].mxu0 %v1230_v30  ;;  %3223 = vmatprep.subr.bf16.mxu0 %v3222_v32  ;;  %v1189_v45 = vmax.f32 %v708_v37, 0.0  ;;  %v1261_v32 = vld [vmem:[#allocation5 + $0x118] sm:$0xf] }
 0x181   :  { %v712_v38 = vadd.f32 %v711_v51, %v3856_v35  ;;  %v713_v39 = vpop.f32.mrb[19].mxu1  ;;  %3225 = vmatpush1.bf16.xpose.msra.mxu0 %v3224_v25  ;;  %1493 = vmatprep.mubr.f32.mxu0 %v1255_v33 }
 0x182   :  { %v714_v41 = vadd.f32 %v713_v39, %v3856_v35  ;;  %3227 = vmatprep.subr.bf16.mxu0 %v3866_v61 }
 0x183   :  { %v1212_v44 = vmax.f32 %v712_v38, 0.0  ;;  %v1260_v38 = vld [vmem:[#allocation5 + $0x110] sm:$0xf] }
 0x184   :  { %v1213_v46 = vmax.f32 %v714_v41, 0.0  ;;  %v859_v47 = vpop.f32.mrb[20].mxu1  ;;  %1494 = vmatmul.mubr.f32.gmra.mrb[18].mxu0 %v1254_v40  ;;  %v1239_v40 = vld [vmem:[#allocation5 + $0x68] sm:$0xff] }
 0x185   :  { %v3232_v48 = vpack.c.bf16 %v1212_v44, %v1188_v43  ;;  %v861_v49 = vpop.f32.mrb[21].mxu1  ;;  %1563 = vmatprep.mubr.f32.mxu0 %v1233_v42  ;;  %v860_v54 = vadd.f32 %v859_v47, %v3852_v28  ;;  %v1263_v47 = vld [vmem:[#allocation5 + $0x128] sm:$0xf] }
 0x186   :  { %v3230_v52 = vpack.c.bf16 %v1213_v46, %v1189_v45  ;;  %v862_v55 = vadd.f32 %v861_v49, %v3852_v28  ;;  %v1272_v49 = vld [vmem:[#allocation5 + $0x170] sm:$0xf] }
 0x187   :  { %v1192_v2 = vmax.f32 %v860_v54, 0.0  ;;  %v1242_v54 = vld [vmem:[#allocation5 + $0x80] sm:$0xff] }
 0x188   :  { %v865_v56 = vpop.f32.mrb[22].mxu1  ;;  %1564 = vmatmul.mubr.f32.vlgmr.msra.gmra.mrb[16].mxu0 %v1232_v50  ;;  %v1193_v4 = vmax.f32 %v862_v55, 0.0  ;;  %v1265_v50 = vld [vmem:[#allocation5 + $0x138] sm:$0xf]  ;;  %v1267_v55 = vld [vmem:[#allocation5 + $0x148] sm:$0xf] }
 0x189   :  { %v866_v61 = vadd.f32 %v865_v56, %v3856_v35  ;;  %v867_v57 = vpop.f32.mrb[23].mxu1  ;;  %3229 = vmatpush1.bf16.xpose.msra.mxu0 %v3864_v58  ;;  %1568 = vmatprep.mubr.f32.mxu0 %v1257_v53  ;;  %v1243_v53 = vld [vmem:[#allocation5 + $0x88] sm:$0xff]  ;;  %v1245_v56 = vld [vmem:[#allocation5 + $0x98] sm:$0xff] }
 0x18a   :  { %v868_v62 = vadd.f32 %v867_v57, %v3856_v35  ;;  %3231 = vmatprep.subr.bf16.mxu0 %v3230_v52  ;;  %v1264_v52 = vld [vmem:[#allocation5 + $0x130] sm:$0xf]  ;;  %v1269_v57 = vld [vmem:[#allocation5 + $0x158] sm:$0xf] }
 0x18b   :  { %v1216_v3 = vmax.f32 %v866_v61, 0.0  ;;  %v1244_v61 = vld [vmem:[#allocation5 + $0x90] sm:$0xff] }
 0x18c   :  { %v1217_v5 = vmax.f32 %v868_v62, 0.0  ;;  %v1013_v6 = vpop.f32.mrb[24].mxu1  ;;  %1569 = vmatmul.mubr.f32.gmra.mrb[18].mxu0 %v1256_v60  ;;  %v1247_v60 = vld [vmem:[#allocation5 + $0xa8] sm:$0xff]  ;;  %v1246_v62 = vld [vmem:[#allocation5 + $0xa0] sm:$0xff] }
 0x18d   :  { %v3240_v7 = vpack.c.bf16 %v1216_v3, %v1192_v2  ;;  %v1015_v8 = vpop.f32.mrb[25].mxu1  ;;  %1638 = vmatprep.mubr.f32.mxu0 %v1235_v63  ;;  %v1014_v58 = vadd.f32 %v1013_v6, %v3852_v28  ;;  %v1271_v63 = vld [vmem:[#allocation5 + $0x168] sm:$0xf]  ;;  %v1249_v2 = vld [vmem:[#allocation5 + $0xb8] sm:$0xff]  ;;  %v1248_v3 = vld [vmem:[#allocation5 + $0xb0] sm:$0xff]  ;;  %v3595_v6 = vmov 0.0|0.0  }
 0x18e   :  { %v3238_v10 = vpack.c.bf16 %v1217_v5, %v1193_v4  ;;  %v1016_v12 = vadd.f32 %v1015_v8, %v3852_v28  ;;  %v2174_v4 = vld [vmem:[#allocation8] sm:$0xff]  ;;  %v2175_v5 = vld [vmem:[#allocation8 + $0x8] sm:$0xff] }
 0x18f   :  { %v1196_v19 = vmax.f32 %v1014_v58, 0.0 }
 0x190   :  { %v1019_v13 = vpop.f32.mrb[26].mxu1  ;;  %1639 = vmatmul.mubr.f32.vlgmr.msra.gmra.mrb[16].mxu0 %v1234_v9  ;;  %v1197_v21 = vmax.f32 %v1016_v12, 0.0  ;;  %v2257_v9 = vld [vmem:[%s4045_s5] sm:$0xff] }
 0x191   :  { %v1020_v14 = vadd.f32 %v1019_v13, %v3856_v35  ;;  %v1021_v15 = vpop.f32.mrb[27].mxu1  ;;  %3233 = vmatpush1.bf16.xpose.msra.mxu0 %v3232_v48  ;;  %1643 = vmatprep.mubr.f32.mxu0 %v1259_v11  ;;  %v1240_v48 = vld [vmem:[#allocation5 + $0x70] sm:$0xff] }
 0x192   :  { %v1022_v17 = vadd.f32 %v1021_v15, %v3856_v35  ;;  %3235 = vmatprep.subr.bf16.mxu0 %v3878_v29  ;;  %v2260_v15 = vld [vmem:[%s4045_s5 + $0x18] sm:$0xff] }
 0x193   :  { %v1220_v20 = vmax.f32 %v1020_v14, 0.0  ;;  %v2259_v14 = vld [vmem:[%s4045_s5 + $0x10] sm:$0xff] }
 0x194   :  { %v1221_v22 = vmax.f32 %v1022_v17, 0.0  ;;  %v1167_v23 = vpop.f32.mrb[28].mxu1  ;;  %1644 = vmatmul.mubr.f32.gmra.mrb[18].mxu0 %v1258_v16 }
 0x195   :  { %v3248_v25 = vpack.c.bf16 %v1220_v20, %v1196_v19  ;;  %v1169_v26 = vpop.f32.mrb[29].mxu1  ;;  %1713 = vmatprep.mubr.f32.mxu0 %v1237_v18  ;;  %v1168_v33 = vadd.f32 %v1167_v23, %v3852_v28  ;;  %v3950_v18 = vpack.c.bf16 %v2260_v15, %v2259_v14 }
 0x196   :  { %v3246_v30 = vpack.c.bf16 %v1221_v22, %v1197_v21  ;;  %v1170_v36 = vadd.f32 %v1169_v26, %v3852_v28  ;;  %v1238_v28 = vld [vmem:[#allocation5 + $0x60] sm:$0xff] }
 0x197   :  { %v1200_v41 = vmax.f32 %v1168_v33, 0.0  ;;  %v2984_v21 = vld [vmem:[%s4046_s6] ss:$0 sm:$0xff]  ;;  %s3598_s6 = smov 32  }
 0x198   :  { %v1173_v37 = vpop.f32.mrb[30].mxu1  ;;  %1714 = vmatmul.mubr.f32.vlgmr.msra.gmra.mrb[16].mxu0 %v1236_v27  ;;  %v1201_v43 = vmax.f32 %v1170_v36, 0.0 }
 0x199   :  { %v1174_v29 = vadd.f32 %v1173_v37, %v3856_v35  ;;  %v1175_v51 = vpop.f32.mrb[31].mxu1  ;;  %3237 = vmatpush1.bf16.xpose.msra.mxu0 %v3876_v24  ;;  %1718 = vmatprep.mubr.f32.mxu0 %v1261_v32  ;;  %v1262_v24 = vld [vmem:[#allocation5 + $0x120] sm:$0xf] }
 0x19a   :  { %v1176_v39 = vadd.f32 %v1175_v51, %v3856_v35  ;;  %3239 = vmatprep.subr.bf16.mxu0 %v3238_v10  ;;  %v1241_v35 = vld [vmem:[#allocation5 + $0x78] sm:$0xff]  ;;  %v2258_v10 = vld [vmem:[%s4045_s5 + $0x8] sm:$0xff] }
 0x19b   :  { %v1224_v42 = vmax.f32 %v1174_v29, 0.0  ;;  %v3940_v13 = vpack.c.bf16 %v2258_v10, %v2257_v9 }
 0x19c   :  { %v1225_v44 = vmax.f32 %v1176_v39, 0.0  ;;  %1719 = vmatmul.mubr.f32.gmra.mrb[18].mxu0 %v1260_v38 }
 0x19d   :  { %v3256_v45 = vpack.c.bf16 %v1224_v42, %v1200_v41  ;;  %1788 = vmatprep.mubr.f32.mxu0 %v1239_v40 }
 0x19e   :  { %v3254_v46 = vpack.c.bf16 %v1225_v44, %v1201_v43 }
 0x1a0   :  { %1789 = vmatmul.mubr.f32.vlgmr.msra.gmra.mrb[16].mxu0 %v1238_v28  ;;  %3300 = vmatprep.subr.bf16.mxu1 %v3254_v46 }
 0x1a1   :  { %3241 = vmatpush1.bf16.xpose.msra.mxu0 %v3240_v7  ;;  %3301 = vmatpush1.bf16.xpose.msra.mxu1 %v3256_v45 }
 0x1a2   :  { %3243 = vmatprep.subr.bf16.mxu0 %v3890_v1  ;;  %1793 = vmatprep.mubr.f32.mxu0 %v1263_v47  ;;  %v1266_v1 = vld [vmem:[#allocation5 + $0x140] sm:$0xf] }
 0x1a3   :  { %3258 = vmatprep.subr.bf16.mxu1 %v3595_v6 }
 0x1a4   :  { %1794 = vmatmul.mubr.f32.gmra.mrb[18].mxu0 %v1262_v24 }
 0x1a5   :  { %1863 = vmatprep.mubr.f32.mxu0 %v1241_v35 }
 0x1a8   :  { %1864 = vmatmul.mubr.f32.vlgmr.msra.gmra.mrb[16].mxu0 %v1240_v48  ;;  %2169 = vmatmul.mubr.f32.vlgmr.msra.gmra.mrb[32].mxu1 %v1272_v49 }
 0x1a9   :  { %3245 = vmatpush1.bf16.xpose.msra.mxu0 %v3888_v59  ;;  %1868 = vmatprep.mubr.f32.mxu0 %v1265_v50  ;;  %v1268_v59 = vld [vmem:[#allocation5 + $0x150] sm:$0xf] }
 0x1aa   :  { %3247 = vmatprep.subr.bf16.mxu0 %v3246_v30  ;;  %3038 = vmatprep.mubr.msk.f32.mxu1 %vm3596_vm1, %v3593_v0 }
 0x1ac   :  { %1869 = vmatmul.mubr.f32.gmra.mrb[18].mxu0 %v1264_v52 }
 0x1ad   :  { %1938 = vmatprep.mubr.f32.mxu0 %v1243_v53 }
 0x1b0   :  { %1939 = vmatmul.mubr.f32.vlgmr.msra.gmra.mrb[16].mxu0 %v1242_v54 }
 0x1b1   :  { %3249 = vmatpush1.bf16.xpose.msra.mxu0 %v3248_v25  ;;  %1943 = vmatprep.mubr.f32.mxu0 %v1267_v55 }
 0x1b2   :  { %3251 = vmatprep.subr.bf16.mxu0 %v3902_v34  ;;  %v1270_v34 = vld [vmem:[#allocation5 + $0x160] sm:$0xf] }
 0x1b4   :  { %1944 = vmatmul.mubr.f32.gmra.mrb[18].mxu0 %v1266_v1 }
 0x1b5   :  { %2013 = vmatprep.mubr.f32.mxu0 %v1245_v56 }
 0x1b8   :  { %2014 = vmatmul.mubr.f32.vlgmr.msra.gmra.mrb[16].mxu0 %v1244_v61 }
 0x1b9   :  { %3253 = vmatpush1.bf16.xpose.msra.mxu0 %v3900_v31  ;;  %2018 = vmatprep.mubr.f32.mxu0 %v1269_v57  ;;  %v3259_v31 = vpack.c.bf16 %v2175_v5, %v2174_v4 }
 0x1ba   :  { %3255 = vmatprep.subr.bf16.mxu0 %v3254_v46 }
 0x1bb   :  { %3260 = vmatpush3.bf16.msra.mxu1 %v3259_v31 }
 0x1bc   :  { %2019 = vmatmul.mubr.f32.gmra.mrb[18].mxu0 %v1268_v59  ;;  %3261 = vmatprep.subr.bf16.mxu1 %v3595_v6 }
 0x1bd   :  { %2088 = vmatprep.mubr.f32.mxu0 %v1247_v60 }
 0x1c0   :  { %2089 = vmatmul.mubr.f32.vlgmr.msra.gmra.mrb[16].mxu0 %v1246_v62 }
 0x1c1   :  { %3257 = vmatpush1.bf16.xpose.msra.mxu0 %v3256_v45  ;;  %2093 = vmatprep.mubr.f32.mxu0 %v1271_v63 }
 0x1c4   :  { %2094 = vmatmul.mubr.f32.gmra.mrb[18].mxu0 %v1270_v34 }
 0x1c5   :  { %2163 = vmatprep.mubr.f32.mxu0 %v1249_v2 }
 0x1c8   :  { %2164 = vmatmul.mubr.f32.vlgmr.msra.gmra.mrb[16].mxu0 %v1248_v3 }
 0x27b   :  { %v2170_v7 = vpop.f32.mrb[32].mxu1 }
 0x27c   :  { %v2172_v8 = vpop.f32.mrb[33].mxu1 }
 0x297   :  { %v2095_v11 = vpop.f32.mrb[18].mxu0 }
 0x298   :  { %v3938_v58 = vadd.f32 %v2170_v7, %v2095_v11  ;;  %v2097_v12 = vpop.f32.mrb[19].mxu0 }
 0x29b   :  { %v2165_v16 = vpop.f32.mrb[16].mxu0 }
 0x29c   :  { %v2167_v17 = vpop.f32.mrb[17].mxu0  ;;  %3039 = vmatmul.mubr.msk.f32.vlgmr.msra.gmra.mrb[34].mxu1 %vm2183_vm2, %v2165_v16 }
 0x29d   :  { %3263 = vmatpush3.bf16.msra.mxu1 %v3940_v13  ;;  %3049 = vmatprep.mubr.msk.f32.mxu1 %vm3596_vm1, %v3593_v0 }
 0x29e   :  { %3264 = vmatprep.subr.bf16.mxu1 %v3595_v6 }
 0x2a1   :  { %3266 = vmatpush3.bf16.msra.mxu1 %v3950_v18 }
 0x2a2   :  { %3267 = vmatprep.subr.bf16.mxu1 %v3595_v6 }
 0x2a4   :  { %3050 = vmatmul.mubr.f32.vlgmr.msra.gmra.mrb[36].mxu1 %v3593_v0 }
 0x2a5   :  { %3269 = vmatpush3.bf16.msra.mxu1 %v3940_v13  ;;  %3060 = vmatprep.mubr.msk.f32.mxu1 %vm3596_vm1, %v3593_v0 }
 0x2a6   :  { %3270 = vmatprep.subr.bf16.mxu1 %v3595_v6 }
 0x2a9   :  { %3272 = vmatpush3.bf16.msra.mxu1 %v3950_v18 }
 0x2aa   :  { %3273 = vmatprep.subr.bf16.mxu1 %v3595_v6 }
 0x36f   :  { %v2253_v19 = vpop.f32.mrb[34].mxu1 }
 0x370   :  { %v3040_v20 = vpop.f32.mrb[35].mxu1  ;;  %v3967_v22 = vadd.f32 %v2984_v21, %v2253_v19 }
 0x377   :  { %v2330_v23 = vpop.f32.mrb[36].mxu1 }
 0x378   :  { %v2334_v25 = vadd.f32 %v2330_v23, %v3967_v22  ;;  %v3051_v26 = vpop.f32.mrb[37].mxu1 }
 0x37a   :  { %3364 = vtanh.f32 %v2334_v25  ;;  %v2986_v30 = vmul.f32 -1.442695, %v2334_v25 }
 0x37c   :  { %3366 = vpow2.f32 %v2986_v30 }
 0x384   :  { %v3365_v27 = vpop.eup %3364 }
 0x385   :  { %2344 = vrot.lane.b32.xlu1 %v3365_v27, %s3597_s2 }
 0x386   :  { %v3367_v32 = vpop.eup %3366 }
 0x387   :  { %v2338_v33 = vadd.f32 1.0, %v3367_v32 }
 0x389   :  { %3368 = vrcp.f32 %v2338_v33 }
 0x393   :  { %v3369_v36 = vpop.eup %3368 }
 0x394   :  { %v2342_v51 = vmul.f32 0.0, %v3369_v36 }
 0x3f7   :  { %v2345_v37 = vpop.permute.xlu1 %2344 }
 0x3f8   :  { %v2347_v29 = vmul.f32 %v3369_v36, %v2345_v37 }
 0x3fa   :  { %2349 = vrot.lane.b32.xlu1 %v2347_v29, %s3598_s6 }
 0x46c   :  { %v2350_v38 = vpop.permute.xlu1 %2349 }
 0x46d   :  { %v2352_v39 = vadd.f32 %v2350_v38, %v2342_v51 }
 0x46f   :  { %3370 = vtanh.f32 %v2352_v39  ;;  %v2447_v53 = vrot.slane %v2352_v39, 6 }
 0x479   :  { %v3371_v40 = vpop.eup %3370 }
 0x47a   :  { %2355 = vrot.lane.b32.xlu0 %v3371_v40, %s3597_s2 }
 0x4ec   :  { %v2356_v41 = vpop.permute.xlu0 %2355 }
 0x4ed   :  { %v3973_v42 = vmul.f32 %v3369_v36, %v2356_v41  ;;  %v2697_v41 = vld [vmem:[#allocation11 + $0x8] sm:$0xff] }
 0x4ef   :  { %2361 = vrot.lane.b32.xlu1 %v3973_v42, %s3598_s6 }
 0x561   :  { %v2362_v43 = vpop.permute.xlu1 %2361 }
 0x562   :  { %3061 = vmatmul.mubr.msk.f32.vlgmr.msra.gmra.mrb[38].mxu1 %vm247_vm0, %v2362_v43 }
 0x563   :  { %3275 = vmatpush3.bf16.msra.mxu1 %v3940_v13  ;;  %3071 = vmatprep.mubr.msk.f32.mxu1 %vm3596_vm1, %v3593_v0 }
 0x564   :  { %3276 = vmatprep.subr.bf16.mxu1 %v3595_v6 }
 0x567   :  { %3278 = vmatpush3.bf16.msra.mxu1 %v3950_v18 }
 0x568   :  { %3279 = vmatprep.subr.bf16.mxu1 %v3595_v6 }
 0x635   :  { %v2431_v44 = vpop.f32.mrb[38].mxu1 }
 0x636   :  { %v2436_v45 = vrot.slane %v2431_v44, 6  ;;  %v3062_v28 = vpop.f32.mrb[39].mxu1 }
 0x638   :  { %v2438_v46 = vadd.f32 %v2436_v45, %v3967_v22  ;;  %v2699_v45 = vld [vmem:[#allocation11 + $0x18] sm:$0xff] }
 0x63a   :  { %3372 = vtanh.f32 %v2438_v46  ;;  %v2988_v24 = vmul.f32 -1.442695, %v2438_v46 }
 0x63c   :  { %3374 = vpow2.f32 %v2988_v24 }
 0x644   :  { %v3373_v47 = vpop.eup %3372 }
 0x645   :  { %2451 = vrot.lane.b32.xlu0 %v3373_v47, %s3597_s2 }
 0x646   :  { %v3375_v35 = vpop.eup %3374 }
 0x647   :  { %v2442_v48 = vadd.f32 1.0, %v3375_v35 }
 0x649   :  { %3376 = vrcp.f32 %v2442_v48 }
 0x653   :  { %v3377_v49 = vpop.eup %3376 }
 0x654   :  { %v2449_v54 = vmul.f32 %v3377_v49, %v2447_v53  ;;  %v2695_v53 = vld [vmem:[#allocation10 + $0x8] sm:$0xff] }
 0x6b7   :  { %v2452_v50 = vpop.permute.xlu0 %2451 }
 0x6b8   :  { %v2454_v52 = vmul.f32 %v3377_v49, %v2452_v50 }
 0x6ba   :  { %2456 = vrot.lane.b32.xlu1 %v2454_v52, %s3598_s6  ;;  %v2694_v52 = vld [vmem:[#allocation10] sm:$0xff] }
 0x72c   :  { %v2457_v55 = vpop.permute.xlu1 %2456 }
 0x72d   :  { %v2459_v1 = vadd.f32 %v2457_v55, %v2449_v54  ;;  %v3292_v54 = vpack.c.bf16 %v2695_v53, %v2694_v52 }
 0x72f   :  { %3378 = vtanh.f32 %v2459_v1  ;;  %v2556_v10 = vrot.slane %v2459_v1, 6  ;;  %v2857_v1 = vld [vmem:[#allocation13] sm:$0xff] }
 0x739   :  { %v3379_v56 = vpop.eup %3378 }
 0x73a   :  { %2462 = vrot.lane.b32.xlu0 %v3379_v56, %s3597_s2  ;;  %v2858_v56 = vld [vmem:[#allocation13 + $0x8] sm:$0xff] }
 0x7ac   :  { %v2463_v61 = vpop.permute.xlu0 %2462 }
 0x7ad   :  { %v2465_v57 = vmul.f32 %v3377_v49, %v2463_v61  ;;  %v3295_v61 = vpack.c.bf16 %v2858_v56, %v2857_v1 }
 0x7af   :  { %v2467_v59 = vrot.slane %v2465_v57, 2  ;;  %v2859_v57 = vld [vmem:[#allocation13 + $0x10] sm:$0xff] }
 0x7b1   :  { %2470 = vrot.lane.b32.xlu1 %v2467_v59, %s3598_s6  ;;  %v2469_v17 = vadd.f32 %v2467_v59, %v3973_v42  ;;  %v2698_v42 = vld [vmem:[#allocation11 + $0x10] sm:$0xff]  ;;  %v2860_v59 = vld [vmem:[#allocation13 + $0x18] sm:$0xff] }
 0x7b2   :  { %v3289_v28 = vpack.c.bf16 %v2699_v45, %v2698_v42 }
 0x823   :  { %v2471_v60 = vpop.permute.xlu1 %2470 }
 0x824   :  { %3072 = vmatmul.mubr.msk.f32.vlgmr.msra.gmra.mrb[40].mxu1 %vm247_vm0, %v2471_v60  ;;  %v3298_v60 = vpack.c.bf16 %v2860_v59, %v2859_v57 }
 0x825   :  { %3281 = vmatpush3.bf16.msra.mxu1 %v3940_v13  ;;  %3082 = vmatprep.mubr.msk.f32.mxu1 %vm3596_vm1, %v3593_v0 }
 0x826   :  { %3282 = vmatprep.subr.bf16.mxu1 %v3595_v6 }
 0x829   :  { %3284 = vmatpush3.bf16.msra.mxu1 %v3950_v18 }
 0x82a   :  { %3285 = vmatprep.subr.bf16.mxu1 %v3595_v6 }
 0x8f7   :  { %v2540_v62 = vpop.f32.mrb[40].mxu1 }
 0x8f8   :  { %v2545_v63 = vrot.slane %v2540_v62, 4  ;;  %v3073_v34 = vpop.f32.mrb[41].mxu1 }
 0x8fa   :  { %v2547_v2 = vadd.f32 %v2545_v63, %v3967_v22 }
 0x8fc   :  { %3380 = vtanh.f32 %v2547_v2  ;;  %v2990_v4 = vmul.f32 -1.442695, %v2547_v2 }
 0x8fe   :  { %3382 = vpow2.f32 %v2990_v4 }
 0x906   :  { %v3381_v3 = vpop.eup %3380 }
 0x907   :  { %2560 = vrot.lane.b32.xlu0 %v3381_v3, %s3597_s2 }
 0x908   :  { %v3383_v5 = vpop.eup %3382 }
 0x909   :  { %v2551_v31 = vadd.f32 1.0, %v3383_v5 }
 0x90b   :  { %3384 = vrcp.f32 %v2551_v31 }
 0x915   :  { %v3385_v7 = vpop.eup %3384 }
 0x916   :  { %v2558_v11 = vmul.f32 %v3385_v7, %v2556_v10 }
 0x979   :  { %v2561_v8 = vpop.permute.xlu0 %2560 }
 0x97a   :  { %v2563_v9 = vmul.f32 %v3385_v7, %v2561_v8 }
 0x97c   :  { %2565 = vrot.lane.b32.xlu1 %v2563_v9, %s3598_s6 }
 0x9ee   :  { %v2566_v12 = vpop.permute.xlu1 %2565 }
 0x9ef   :  { %v2568_v13 = vadd.f32 %v2566_v12, %v2558_v11 }
 0x9f1   :  { %3386 = vtanh.f32 %v2568_v13  ;;  %v2665_v51 = vrot.slane %v2568_v13, 6 }
 0x9fb   :  { %v3387_v14 = vpop.eup %3386 }
 0x9fc   :  { %2571 = vrot.lane.b32.xlu0 %v3387_v14, %s3597_s2 }
 0xa6e   :  { %v2572_v15 = vpop.permute.xlu0 %2571 }
 0xa6f   :  { %v2574_v16 = vmul.f32 %v3385_v7, %v2572_v15 }
 0xa71   :  { %v2576_v18 = vrot.slane %v2574_v16, 4 }
 0xa73   :  { %v2578_v19 = vadd.f32 %v2576_v18, %v2469_v17  ;;  %2579 = vrot.lane.b32.xlu1 %v2576_v18, %s3598_s6 }
 0xae5   :  { %v2580_v20 = vpop.permute.xlu1 %2579 }
 0xae6   :  { %3083 = vmatmul.mubr.msk.f32.vlgmr.msra.gmra.mrb[42].mxu1 %vm247_vm0, %v2580_v20 }
 0xae7   :  { %3093 = vmatprep.mubr.msk.f32.mxu1 %vm3596_vm1, %v3593_v0 }
 0xbb9   :  { %v2649_v21 = vpop.f32.mrb[42].mxu1 }
 0xbba   :  { %v2654_v23 = vrot.slane %v2649_v21, 2  ;;  %v3084_v25 = vpop.f32.mrb[43].mxu1 }
 0xbbc   :  { %v2656_v26 = vadd.f32 %v2654_v23, %v3967_v22  ;;  %v2696_v22 = vld [vmem:[#allocation11] sm:$0xff] }
 0xbbd   :  { %v3286_v44 = vpack.c.bf16 %v2697_v41, %v2696_v22 }
 0xbbe   :  { %3388 = vtanh.f32 %v2656_v26  ;;  %v2992_v30 = vmul.f32 -1.442695, %v2656_v26 }
 0xbbf   :  { %3287 = vmatpush3.bf16.msra.mxu1 %v3286_v44 }
 0xbc0   :  { %3390 = vpow2.f32 %v2992_v30  ;;  %3288 = vmatprep.subr.bf16.mxu1 %v3595_v6 }
 0xbc3   :  { %3290 = vmatpush3.bf16.msra.mxu1 %v3289_v28 }
 0xbc4   :  { %3291 = vmatprep.subr.bf16.mxu1 %v3595_v6 }
 0xbc8   :  { %v3389_v27 = vpop.eup %3388 }
 0xbc9   :  { %2669 = vrot.lane.b32.xlu0 %v3389_v27, %s3597_s2 }
 0xbca   :  { %v3391_v32 = vpop.eup %3390 }
 0xbcb   :  { %v2660_v33 = vadd.f32 1.0, %v3391_v32 }
 0xbcd   :  { %3392 = vrcp.f32 %v2660_v33 }
 0xbd7   :  { %v3393_v36 = vpop.eup %3392 }
 0xbd8   :  { %v2667_v38 = vmul.f32 %v3393_v36, %v2665_v51 }
 0xc3b   :  { %v2670_v37 = vpop.permute.xlu0 %2669 }
 0xc3c   :  { %v2672_v29 = vmul.f32 %v3393_v36, %v2670_v37 }
 0xc3e   :  { %2674 = vrot.lane.b32.xlu1 %v2672_v29, %s3598_s6 }
 0xcb0   :  { %v2675_v39 = vpop.permute.xlu1 %2674 }
 0xcb1   :  { %v2677_v40 = vadd.f32 %v2675_v39, %v2667_v38 }
 0xcb3   :  { %3394 = vtanh.f32 %v2677_v40 }
 0xcbd   :  { %v3395_v43 = vpop.eup %3394 }
 0xcbe   :  { %2680 = vrot.lane.b32.xlu0 %v3395_v43, %s3597_s2 }
 0xd30   :  { %v2681_v46 = vpop.permute.xlu0 %2680 }
 0xd31   :  { %v2683_v47 = vmul.f32 %v3393_v36, %v2681_v46 }
 0xd33   :  { %v2685_v24 = vrot.slane %v2683_v47, 6 }
 0xd35   :  { %v2687_v35 = vadd.f32 %v2685_v24, %v2578_v19 }
 0xd37   :  { %v2688_v48 = vmul.f32 0.25, %v2687_v35 }
 0xd39   :  { %v2690_v49 = vrot.slane %v2688_v48, 6 }
 0xd3b   :  { %v2693_v50 = vsel %vm2692_vm3, %v2688_v48, %v2690_v49 }
 0xd3c   :  { %2701 = vrot.lane.b32.xlu1 %v2693_v50, %s3598_s6 }
 0xdae   :  { %v2702_v55 = vpop.permute.xlu1 %2701 }
 0xdaf   :  { %3094 = vmatmul.mubr.msk.f32.vlgmr.msra.gmra.mrb[44].mxu1 %vm247_vm0, %v2702_v55 }
 0xdb0   :  { %3293 = vmatpush3.bf16.msra.mxu1 %v3292_v54  ;;  %3100 = vmatprep.mubr.msk.f32.mxu1 %vm3596_vm1, %v3593_v0 }
 0xdb1   :  { %3294 = vmatprep.subr.bf16.mxu1 %v3595_v6 }
 0xdb3   :  { %3101 = vmatmul.mubr.msk.f32.vlgmr.msra.gmra.mrb[46].mxu1 %vm2183_vm2, %v3938_v58  ;;  %v2995_v58 = vld [vmem:[%s4049_s9] ss:$0 sm:$0xff] }
 0xdb4   :  { %3111 = vmatprep.mubr.msk.f32.mxu1 %vm3596_vm1, %v3593_v0  ;;  %3296 = vmatpush3.bf16.msra.mxu1 %v3295_v61 }
 0xdb5   :  { %3297 = vmatprep.subr.bf16.mxu1 %v3595_v6  ;;  %v2996_v6 = vld [vmem:[%s4051_s11] ss:$0 sm:$0xff] }
 0xdb8   :  { %3299 = vmatpush3.bf16.msra.mxu1 %v3298_v60 }
 0xe82   :  { %v2771_v62 = vpop.f32.mrb[44].mxu1 }
 0xe83   :  { %v3095_v63 = vpop.f32.mrb[45].mxu1 }
 0xe86   :  { %v2844_v34 = vpop.f32.mrb[46].mxu1 }
 0xe87   :  { %v2845_v2 = vadd.f32 %v2844_v34, %v2771_v62  ;;  %v3102_v3 = vpop.f32.mrb[47].mxu1 }
 0xe89   :  { %v2855_v0 = vadd.f32 %v2995_v58, %v2845_v2 }
 0xe8b   :  { %v2856_v4 = vmax.f32 %v2855_v0, 0.0 }
 0xe8d   :  { %3112 = vmatmul.mubr.msk.f32.vlgmr.msra.gmra.mrb[48].mxu1 %vm247_vm0, %v2856_v4 }
 0xf60   :  { %v2937_v5 = vpop.f32.mrb[48].mxu1 }
 0xf61   :  { %v2938_v31 = vadd.f32 %v2996_v6, %v2937_v5  ;;  %v3113_v7 = vpop.f32.mrb[49].mxu1 }
 0xf63   :  { %2941 = vst [vmem:[#allocation14] sm:$0xf] %v2938_v31 }
 0xf64   :  { %3561 = shalt.err (!%p3558_p4)
}
 0xf65   :  { %s3562_s13 = scalar_lea.hbm %s4052_s12, 64 }
 0xf66   :  { %p3563_p5 = scmp.ne.s32.totalorder %s4052_s12, %s3562_s13  ;;  %p3566_p6 = scmp.lt.u32.totalorder %s3562_s13, %s4052_s12 }
 0xf68   :  { %p3568_p7 = pnand %p3566_p6, %p3563_p5 }
 0xf6a   :  { %3571 = shalt.err (!%p3568_p7)
}
 0xf6b   :  { %2951 = dma.vmem_to_hbm [thread:$0]  %s2949_s16, 64, %s4052_s12, [#allocation4]  }
 0xf6c   :  { %3580 = dma.done.wait [#allocation4], 64  }
 0xf6d   :  { %3581 = vsyncadd [#allocation4], 4294967232 }
 0xf6e   :  { %2955 = vsyncpa [#allocation3], 1 }
 0xf6f   :  { %2956 = vsyncpa [#allocation6], 1 }
 0xf70   :  { %2957 = vsyncpa [#allocation9], 1 }
 0xf71   :  { %2958 = vsyncpa [#allocation12], 1 }
 0xf72   :  { %2959 = vsyncpa [#allocation4], 1 }

</bundles_post_ra>
